<compile_context>
chip_gen: v5e
topology: v5e:2x2
jax: 0.10.0
libtpu: 0.0.40
codegen_flags: <defaults>
</compile_context>

<pallas_src>
import jax
import jax.numpy as jnp
from jax.experimental import pallas as pl
from jax.experimental.pallas import tpu as pltpu


def _round_up(x, m):
    return ((x + m - 1) // m) * m


# Far-away sentinel for padded points: squared distance to any real point is
# ~3e12, so padded points never win a min for real points.
_PAD_SENTINEL = 1.0e6


def _chamfer_kernel(gt_ref, rec_ref, min_gt_part_ref, min_rec_ref):
    # gt_ref:          (TB, 5, TN)  augmented gt tile  [-2x,-2y,-2z,||p||^2,1]
    # rec_ref:         (TB, 5, TM)  augmented rec tile [ x,  y,  z, 1, ||p||^2]
    # min_gt_part_ref: (TB, 1, TM)  per-gt-tile partial min over gt points
    # min_rec_ref:     (TB, 1, TN)  running min over rec points (accum over j)
    j = pl.program_id(2)

    # Tiny in-VMEM relayout so the pairwise matmul is the standard
    # (TB, TN, K) @ (TB, K, TM) batched form (K = 5, padded to 8 sublanes).
    xt = jnp.swapaxes(gt_ref[...], 1, 2)               # (TB, TN, 5)

    # P[b, n, m] = ||x_n||^2 + ||y_m||^2 - 2 x_n . y_m  -- straight off the MXU.
    P = jax.lax.dot_general(
        xt, rec_ref[...],
        dimension_numbers=(((2,), (1,)), ((0,), (0,))),
        preferred_element_type=jnp.float32)            # (TB, TN, TM)

    # torch.min(P, 1): min over gt points of this i-tile -> one value per rec
    # point in this j-tile.  Written once per grid step (no accumulation).
    min_gt_part_ref[...] = jnp.min(P, axis=1, keepdims=True)       # (TB, 1, TM)

    # torch.min(P, 2): min over rec points of this j-tile -> one value per gt
    # point; transposed to a lane-dense row and min-accumulated over j.
    row = jnp.swapaxes(jnp.min(P, axis=2, keepdims=True), 1, 2)    # (TB, 1, TN)

    @pl.when(j == 0)
    def _():
        min_rec_ref[...] = row

    @pl.when(j > 0)
    def _():
        min_rec_ref[...] = jnp.minimum(min_rec_ref[...], row)


@jax.jit
def chamfer_mins(ground_truth, reconstruction):
    """ground_truth (B, N, 3), reconstruction (B, M, 3) ->
    (min_over_gt (B, M), min_over_rec (B, N)) squared distances."""
    B, N, _ = ground_truth.shape
    _, M, _ = reconstruction.shape

    # Tile sizes: up to 8 batch elements and 256-point tiles per grid step.
    # Worst-case P tile = 8*256*256*4 B = 2 MiB -> comfortably inside the
    # default scoped-VMEM limit on v5e/v6e/v7x, incl. double-buffered inputs.
    TB = min(B, 8)
    TN = min(_round_up(N, 128), 256)
    TM = min(_round_up(M, 128), 256)
    Bp = _round_up(B, TB)
    Np = _round_up(N, TN)
    Mp = _round_up(M, TM)
    nb, ni, nj = Bp // TB, Np // TN, Mp // TM

    # (B, N, 3) -> (Bp, 3, Np): lane-dense point axis, xyz on sublanes, padded
    # with the sentinel on both the batch and point axes.
    gt = jnp.transpose(ground_truth.astype(jnp.float32), (0, 2, 1))
    rec = jnp.transpose(reconstruction.astype(jnp.float32), (0, 2, 1))
    gt = jnp.pad(gt, ((0, Bp - B), (0, 0), (0, Np - N)),
                 constant_values=_PAD_SENTINEL)
    rec = jnp.pad(rec, ((0, Bp - B), (0, 0), (0, Mp - M)),
                  constant_values=_PAD_SENTINEL)

    # Augment once per point (not once per tile pair inside the kernel):
    #   gt_aug  = [-2x, -2y, -2z, ||p||^2, 1]    (Bp, 5, Np)
    #   rec_aug = [  x,   y,   z, 1, ||p||^2]    (Bp, 5, Mp)
    # so that gt_aug^T . rec_aug gives the full squared-distance matrix.
    gt_sq = jnp.sum(gt * gt, axis=1, keepdims=True)
    rec_sq = jnp.sum(rec * rec, axis=1, keepdims=True)
    gt_aug = jnp.concatenate(
        [gt * jnp.float32(-2.0), gt_sq, jnp.ones_like(gt_sq)], axis=1)
    rec_aug = jnp.concatenate(
        [rec, jnp.ones_like(rec_sq), rec_sq], axis=1)

    min_gt_part, min_rec = pl.pallas_call(
        _chamfer_kernel,
        out_shape=(jax.ShapeDtypeStruct((ni, Bp, 1, Mp), jnp.float32),
                   jax.ShapeDtypeStruct((Bp, 1, Np), jnp.float32)),
        grid_spec=pltpu.PrefetchScalarGridSpec(
            num_scalar_prefetch=0,
            grid=(nb, ni, nj),
            in_specs=[pl.BlockSpec((TB, 5, TN), lambda b, i, j: (b, 0, i)),
                      pl.BlockSpec((TB, 5, TM), lambda b, i, j: (b, 0, j))],
            out_specs=[pl.BlockSpec((None, TB, 1, TM), lambda b, i, j: (i, b, 0, j)),
                       pl.BlockSpec((TB, 1, TN), lambda b, i, j: (b, 0, i))]),
        compiler_params=pltpu.CompilerParams(
            dimension_semantics=("parallel", "parallel", "arbitrary")),
    )(gt_aug, rec_aug)

    # Finish the (tiny) min over the gt-tile axis and drop padded rows/points.
    min_over_gt = jnp.min(min_gt_part, axis=0)[:B, 0, :M]   # (B, M)
    min_over_rec = min_rec[:B, 0, :N]                       # (B, N)
    return min_over_gt, min_over_rec


class ChamferLoss:
    """JAX/Pallas port of the PyTorch ChamferLoss (non-surface-normal path)."""

    def __init__(self, sn_anneal=False, max_SN_loss_weight=1.0,
                 low_lambda_period=0, num_cycles=1, num_epochs=100):
        self.loss_anneal = sn_anneal
        self.max_SN_loss_weight = max_SN_loss_weight
        self.low_lambda_period = low_lambda_period
        self.num_cycles = num_cycles
        self.max_epochs = num_epochs
        self.current_epoch = 0
        self.backprop_num = 0

    def delayed_anneal(self):
        return min(1, max(0.0, 1 * (self.current_epoch - 350) / 150))

    def forward(self, ground_truth, reconstruction, surface_normals_tuple=None):
        # TODO(synk): surface-normal branch (argmin-index gather of gt normals +
        # acos angle penalty) is not implemented; only the plain chamfer path is.
        min_over_gt, min_over_rec = chamfer_mins(ground_truth, reconstruction)
        loss_1 = jnp.mean(jnp.maximum(min_over_gt, 1e-10))   # torch.min(P, 1) path
        loss_2 = jnp.mean(jnp.maximum(min_over_rec, 1e-10))  # torch.min(P, 2) path
        beta = self.delayed_anneal()
        chamfer = (loss_1 + loss_2) * 1000.0
        return {'total_loss': chamfer, 'chamfer': chamfer, 'kl_coeff': beta}


if __name__ == "__main__":
    key = jax.random.PRNGKey(0)
    k1, k2 = jax.random.split(key)
    # Small but non-trivial shapes: exercises batch blocking, gt/rec tiling
    # (2x2 point tiles) and sentinel padding of the ragged tails.
    B, N, M = 2, 330, 270
    ground_truth = jax.random.normal(k1, (B, N, 3), dtype=jnp.float32)
    reconstruction = jax.random.normal(k2, (B, M, 3), dtype=jnp.float32)

    loss_mod = ChamferLoss(num_epochs=100)
    out = loss_mod.forward(ground_truth, reconstruction)
    jax.block_until_ready(out['total_loss'])

    # pure-JAX reference for correctness
    P = (jnp.sum(ground_truth ** 2, -1)[:, :, None]
         + jnp.sum(reconstruction ** 2, -1)[:, None, :]
         - 2.0 * jnp.einsum('bnd,bmd->bnm', ground_truth, reconstruction))
    ref_min_gt = jnp.min(P, axis=1)    # (B, M)
    ref_min_rec = jnp.min(P, axis=2)   # (B, N)
    ref = (jnp.mean(jnp.maximum(ref_min_gt, 1e-10))
           + jnp.mean(jnp.maximum(ref_min_rec, 1e-10))) * 1000.0

    got_min_gt, got_min_rec = chamfer_mins(ground_truth, reconstruction)
    assert jnp.allclose(got_min_gt, ref_min_gt, rtol=1e-3, atol=1e-3), "min_over_gt mismatch"
    assert jnp.allclose(got_min_rec, ref_min_rec, rtol=1e-3, atol=1e-3), "min_over_rec mismatch"
    assert jnp.allclose(out['total_loss'], ref, rtol=1e-3, atol=1e-2), (
        out['total_loss'], ref)

    print("KERNEL_OK")
</pallas_src>

<mosaic_0001>
module attributes {stable_mosaic.version = 11 : i64} {
  func.func @_chamfer_kernel(%arg0: i32, %arg1: i32, %arg2: i32, %arg3: memref<2x5x256xf32, #tpu.memory_space<vmem>>, %arg4: memref<2x5x256xf32, #tpu.memory_space<vmem>>, %arg5: memref<1x2x1x256xf32, #tpu.memory_space<vmem>>, %arg6: memref<2x1x256xf32, #tpu.memory_space<vmem>>) attributes {dimension_semantics = [#tpu.dimension_semantics<parallel>, #tpu.dimension_semantics<parallel>, #tpu.dimension_semantics<arbitrary>], iteration_bounds = array<i64: 1, 2, 2>, scalar_prefetch = 0 : i64, scratch_operands = 0 : i64, tpu.core_type = #tpu.core_type<tc>, window_params = [{transform_indices = @transform_0, window_bounds = array<i64: 2, 5, 256>}, {transform_indices = @transform_1, window_bounds = array<i64: 2, 5, 256>}, {transform_indices = @transform_2, window_bounds = array<i64: 1, 2, 1, 256>}, {transform_indices = @transform_3, window_bounds = array<i64: 2, 1, 256>}]} {
    %c0 = arith.constant 0 : index
    %c0_0 = arith.constant 0 : index
    %c0_1 = arith.constant 0 : index
    %0 = vector.load %arg3[%c0, %c0_0, %c0_1] : memref<2x5x256xf32, #tpu.memory_space<vmem>>, vector<2x5x256xf32>
    %1 = tpu.transpose %0, [0, 2, 1] : vector<2x5x256xf32> -> vector<2x256x5xf32>
    %c0_2 = arith.constant 0 : index
    %c0_3 = arith.constant 0 : index
    %c0_4 = arith.constant 0 : index
    %2 = vector.load %arg4[%c0_2, %c0_3, %c0_4] : memref<2x5x256xf32, #tpu.memory_space<vmem>>, vector<2x5x256xf32>
    %cst = arith.constant dense<0.000000e+00> : vector<2x256x256xf32>
    %3 = tpu.matmul %1, %2, %cst {dimension_numbers = #tpu.dot_dimension_numbers<[2], [1], [1], [2], [0, 0, 0, 1, 1, 2], [0], [0]>} : vector<2x256x5xf32>, vector<2x5x256xf32>, vector<2x256x256xf32> -> vector<2x256x256xf32>
    %cst_5 = arith.constant dense<0x7F800000> : vector<2x256xf32>
    %4 = vector.multi_reduction <minimumf>, %3, %cst_5 [1] : vector<2x256x256xf32> to vector<2x256xf32>
    %5 = vector.shape_cast %4 : vector<2x256xf32> to vector<2x1x256xf32>
    %c0_6 = arith.constant 0 : index
    %c0_7 = arith.constant 0 : index
    %c0_8 = arith.constant 0 : index
    %c0_9 = arith.constant 0 : index
    %6 = vector.load %arg5[%c0_6, %c0_7, %c0_8, %c0_9] : memref<1x2x1x256xf32, #tpu.memory_space<vmem>>, vector<1x2x1x256xf32>
    %7 = vector.shape_cast %6 : vector<1x2x1x256xf32> to vector<2x1x256xf32>
    %8 = vector.shape_cast %5 : vector<2x1x256xf32> to vector<1x2x1x256xf32>
    tpu.vector_store %arg5[%c0_6, %c0_7, %c0_8, %c0_9], %8 {strides = array<i32>} : memref<1x2x1x256xf32, #tpu.memory_space<vmem>>, vector<1x2x1x256xf32>,
    %cst_10 = arith.constant dense<0x7F800000> : vector<2x256xf32>
    %9 = vector.multi_reduction <minimumf>, %3, %cst_10 [2] : vector<2x256x256xf32> to vector<2x256xf32>
    %10 = vector.shape_cast %9 : vector<2x256xf32> to vector<2x256x1xf32>
    %11 = tpu.transpose %10, [0, 2, 1] : vector<2x256x1xf32> -> vector<2x1x256xf32>
    %c0_i32 = arith.constant 0 : i32
    %12 = arith.cmpi eq, %arg2, %c0_i32 : i32
    %13 = arith.extui %12 : i1 to i32
    %c0_i32_11 = arith.constant 0 : i32
    %14 = arith.cmpi ne, %13, %c0_i32_11 : i32
    scf.if %14 {
      %c0_14 = arith.constant 0 : index
      %c0_15 = arith.constant 0 : index
      %c0_16 = arith.constant 0 : index
      %18 = vector.load %arg6[%c0_14, %c0_15, %c0_16] : memref<2x1x256xf32, #tpu.memory_space<vmem>>, vector<2x1x256xf32>
      tpu.vector_store %arg6[%c0_14, %c0_15, %c0_16], %11 {strides = array<i32>} : memref<2x1x256xf32, #tpu.memory_space<vmem>>, vector<2x1x256xf32>,
    } else {
    }
    %c0_i32_12 = arith.constant 0 : i32
    %15 = arith.cmpi sgt, %arg2, %c0_i32_12 : i32
    %16 = arith.extui %15 : i1 to i32
    %c0_i32_13 = arith.constant 0 : i32
    %17 = arith.cmpi ne, %16, %c0_i32_13 : i32
    scf.if %17 {
      %c0_14 = arith.constant 0 : index
      %c0_15 = arith.constant 0 : index
      %c0_16 = arith.constant 0 : index
      %18 = vector.load %arg6[%c0_14, %c0_15, %c0_16] : memref<2x1x256xf32, #tpu.memory_space<vmem>>, vector<2x1x256xf32>
      %19 = arith.minimumf %18, %11 : vector<2x1x256xf32>
      %c0_17 = arith.constant 0 : index
      %c0_18 = arith.constant 0 : index
      %c0_19 = arith.constant 0 : index
      %20 = vector.load %arg6[%c0_17, %c0_18, %c0_19] : memref<2x1x256xf32, #tpu.memory_space<vmem>>, vector<2x1x256xf32>
      tpu.vector_store %arg6[%c0_17, %c0_18, %c0_19], %19 {strides = array<i32>} : memref<2x1x256xf32, #tpu.memory_space<vmem>>, vector<2x1x256xf32>,
    } else {
    }
    return
  }
  func.func @transform_0(%arg0: i32, %arg1: i32, %arg2: i32) -> (i32, i32, i32) {
    %c0_i32 = arith.constant 0 : i32
    %c0_i32_0 = arith.constant 0 : i32
    return %arg0, %c0_i32, %arg1 : i32, i32, i32
  }
  func.func @transform_1(%arg0: i32, %arg1: i32, %arg2: i32) -> (i32, i32, i32) {
    %c0_i32 = arith.constant 0 : i32
    %c0_i32_0 = arith.constant 0 : i32
    return %arg0, %c0_i32, %arg2 : i32, i32, i32
  }
  func.func @transform_2(%arg0: i32, %arg1: i32, %arg2: i32) -> (i32, i32, i32, i32) {
    %c0_i32 = arith.constant 0 : i32
    %c0_i32_0 = arith.constant 0 : i32
    return %arg1, %arg0, %c0_i32, %arg2 : i32, i32, i32, i32
  }
  func.func @transform_3(%arg0: i32, %arg1: i32, %arg2: i32) -> (i32, i32, i32) {
    %c0_i32 = arith.constant 0 : i32
    %c0_i32_0 = arith.constant 0 : i32
    return %arg0, %c0_i32, %arg1 : i32, i32, i32
  }
}

</mosaic_0001>

<bundles_post_ra>
// kernel: chamfer_mins.1
= control target key start
LH: loop header
LB: loop body
LE: loop exit
PB: predicated region body
PF: predicated region fallthrough
CT: control target
= control target key end

     0   :  { %s2186_s12 = smov 0   ;;  %s2188_s13 = smov 0   ;;  %s3044_s0 = inlined_call_operand.vmem [shape: f32[2,5,512], index: 0, kind: input, shape index: {}]   ;;  %s3045_s1 = inlined_call_operand.vmem [shape: f32[2,5,512], index: 1, kind: input, shape index: {}]   ;;  %s3046_s2 = inlined_call_operand.vmem [shape: f32[2,2,1,512], index: 2, kind: output, shape index: {0}]   ;;  %s3047_s3 = inlined_call_operand.vmem [shape: f32[2,1,512], index: 3, kind: output, shape index: {1}]  }
   0x1   :  { %s2190_s14 = smov 0   ;;  %s2192_s15 = smov 0  }
   0x2   :  { %s2194_s16 = smov 0   ;;  %s2196_s17 = smov 0  }
   0x3   :  { %s2198_s18 = smov 0   ;;  %s2200_s19 = smov 0  }
   0x4   :  { %s2202_s20 = smov 0   ;;  %s2204_s21 = smov 0  }
   0x5   :  { %s2206_s22 = smov 0  }
   0x6 LB: > { %s1831_s23 = sadd.s32 4294967295, %s2164_s22   ;;  %s26_s24 = sadd.s32 1, %s2156_s20  ;;  %s2164_s22 = sphi %s2206_s22, %s14_s22   ;;  %s2160_s21 = sphi %s2204_s21, %s3106_s21   ;;  %s2156_s20 = sphi %s2202_s20, %s3105_s20   ;;  %s2152_s19 = sphi %s2200_s19, %s3104_s19   ;;  %s2148_s18 = sphi %s2198_s18, %s3103_s18   ;;  %s2144_s17 = sphi %s2196_s17, %s3102_s17   ;;  %s2140_s16 = sphi %s2194_s16, %s3101_s16   ;;  %s2136_s15 = sphi %s2192_s15, %s3100_s15   ;;  %s2132_s14 = sphi %s2190_s14, %s3099_s14   ;;  %s2128_s13 = sphi %s2188_s13, %s3098_s13   ;;  %s2124_s12 = sphi %s2186_s12, %s3097_s12  }
   0x7   : > { %p27_p0 = scmp.ge.s32.totalorder %s26_s24, 2  ;;  %s29_s25 = sadd.s32 1, %s2160_s21 }
   0x8   : > { %s42_s26 = sadd.s32 1, %s2144_s17  ;;  %p49_p1 = scmp.ne.s32.totalorder %s2144_s17, %s2140_s16 }
   0x9   : > { %s3108_s24 = smov (%p27_p0, %s26_s24), 0  ;;  %s3110_s25 = smov (!%p27_p0, %s29_s25), %s2160_s21 }
   0xa   : > { %p50_p2 = scmp.eq.s32.totalorder %s2164_s22, 0  ;;  %s66_s27 = ssub.s32 %s2156_s20, %s3108_s24 }
   0xb   : > { %p31_p3 = scmp.ge.s32.totalorder %s3110_s25, 2  ;;  %p68_p4 = scmp.eq.s32.totalorder %s66_s27, 0 }
   0xc   : > { %p2256_p5 = por %p50_p2, %p49_p1  ;;  %s70_s29 = sadd.s32 1, %s2136_s15 }
   0xd   : > { %s3112_s25 = smov (%p31_p3, %s3110_s25), 0  ;;  %p77_p6 = scmp.ne.s32.totalorder %s2136_s15, %s2132_s14 }
   0xe   : > { %3051 = sst [smem:[#allocation6_spill]] %s3112_s25  ;;  %s38_s4 = ssub.s32 %s2160_s21, %s3112_s25 }
   0xf   : > { %s2264_s30 = scalar_select %p68_p4, %s2136_s15, %s70_s29  }
  0x10   : > { %p40_p7 = scmp.eq.s32.totalorder %s38_s4, 0  ;;  %s97_s5 = sor.u32 %s66_s27, %s38_s4 }
  0x11   : > { %p2270_p8 = por %p77_p6, %p50_p2  ;;  %p98_p9 = scmp.eq.s32.totalorder %s97_s5, 0 }
  0x12   : > { %s2275_s7 = scalar_select %p40_p7, %s2144_s17, %s42_s26  }
  0x13   : > { %s100_s8 = sadd.s32 1, %s2128_s13  ;;  %p110_p10 = scmp.ne.s32.totalorder %s2128_s13, %s2124_s12 }
  0x14   : > { %s2281_s9 = scalar_select %p98_p9, %s2128_s13, %s100_s8  }
  0x15   : > { %p111_p11 = scmp.eq.s32.totalorder %s1831_s23, 3  ;;  %p1834_p0 = scmp.ge.s32.totalorder %s2164_s22, 4 }
  0x17   : > { %p2283_p12 = por %p111_p11, %p110_p10  ;;  %p2290_p13 = por %p111_p11, %p49_p1 }
  0x18   : > { %161 = sbr.rel (%p1834_p0) target bundleno = 45 (0x2d), region = 16 }
  0x1d   : > { %164 = sbr.rel (!%p2256_p5) target bundleno = 37 (0x25), region = 20  ;;  %s166_s26 = sand.u32 (%p2256_p5), 1, %s2144_s17  }
  0x1e   : > { %s1987_s27 = sshll.u32 (%p2256_p5), %s2160_s21, 4  ;;  %s1835_s23 = sshll.u32 (%p2256_p5), %s166_s26, 5 }
  0x1f   : > { %s174_s5 = scalar_lea.vmem (%p2256_p5), %s3044_s0, %s1987_s27  ;;  %s168_s8 = scalar_lea.vmem (%p2256_p5), [#allocation2], %s1835_s23 }
  0x20   : > { %v187_v0 = vld [vmem:[%s174_s5] sm:$0xff] (%p2256_p5)  ;;  %v189_v1 = vld [vmem:[%s174_s5 + $0x8] sm:$0xff] (%p2256_p5) }
  0x21   : > { %v191_v2 = vld [vmem:[%s174_s5 + $0x20] sm:$0xff] (%p2256_p5)  ;;  %188 = vst [vmem:[%s168_s8] sm:$0xff] (%p2256_p5), %v187_v0  ;;  %v193_v3 = vld [vmem:[%s174_s5 + $0x28] sm:$0xff] (%p2256_p5) }
  0x22   : > { %190 = vst [vmem:[%s168_s8 + $0x8] sm:$0xff] %v189_v1 }
  0x23   : > { %192 = vst [vmem:[%s168_s8 + $0x10] sm:$0xff] %v191_v2 }
  0x24   : > { %194 = vst [vmem:[%s168_s8 + $0x18] sm:$0xff] %v193_v3 }
  0x25 PF: > { %200 = sbr.rel (!%p2270_p8) target bundleno = 45 (0x2d), region = 43  ;;  %s202_s28 = sand.u32 (%p2270_p8), 1, %s2136_s15  }
  0x26   : > { %s1988_s26 = sshll.u32 (%p2270_p8), %s2156_s20, 4  ;;  %s1838_s25 = sshll.u32 (%p2270_p8), %s202_s28, 5 }
  0x27   : > { %s210_s4 = scalar_lea.vmem (%p2270_p8), %s3045_s1, %s1988_s26  ;;  %s204_s23 = scalar_lea.vmem (%p2270_p8), [#allocation3], %s1838_s25 }
  0x28   : > { %v223_v4 = vld [vmem:[%s210_s4] sm:$0xff] (%p2270_p8)  ;;  %v225_v5 = vld [vmem:[%s210_s4 + $0x8] sm:$0xff] (%p2270_p8) }
  0x29   : > { %v227_v6 = vld [vmem:[%s210_s4 + $0x20] sm:$0xff] (%p2270_p8)  ;;  %224 = vst [vmem:[%s204_s23] sm:$0xff] (%p2270_p8), %v223_v4  ;;  %v229_v7 = vld [vmem:[%s210_s4 + $0x28] sm:$0xff] (%p2270_p8) }
  0x2a   : > { %226 = vst [vmem:[%s204_s23 + $0x8] sm:$0xff] %v225_v5 }
  0x2b   : > { %228 = vst [vmem:[%s204_s23 + $0x10] sm:$0xff] %v227_v6 }
  0x2c   : > { %230 = vst [vmem:[%s204_s23 + $0x18] sm:$0xff] %v229_v7 }
  0x2d PF: > { %p1841_p1 = scmp.ge.s32.totalorder %s2164_s22, 1  ;;  %p235_p2 = scmp.lt.s32.totalorder %s2164_s22, 5 }
  0x2f   : > { %p236_p3 = pnand %p1841_p1, %p235_p2 }
  0x31   : > { %239 = sbr.rel (%p236_p3) target bundleno = 978 (0x3d2), region = 66 }
  0x36   : > { %s242_s6 = sand.u32 1, %s2140_s16   ;;  %s249_s28 = sand.u32 1, %s2132_s14   ;;  %vm520_vm0 = vcmask 1044480   ;;  %vm423_vm1 = vcmask 39936   ;;  %vm1235_vm2 = vcmask 1040384  }
  0x37   : > { %s1842_s5 = sshll.u32 %s242_s6, 5  ;;  %s2312_s8 = sshll.u32 %s242_s6, 2 }
  0x38   : > { %s244_s25 = scalar_lea.vmem [#allocation2], %s1842_s5  ;;  %s1843_s26 = sshll.u32 %s249_s28, 5 }
  0x39   : > { %v289_v8 = vld [vmem:[%s244_s25 + $0x10] sm:$0x1f]  ;;  %v287_v9 = vld [vmem:[%s244_s25] sm:$0x1f]  ;;  %s251_s29 = scalar_lea.vmem [#allocation3], %s1843_s26  ;;  %s270_s14 = sand.u32 1, %s2124_s12  }
  0x3a   : > { %355 = vxpose.xlu1.b32.start.end [1/1] (short) %v289_v8, 128  ;;  %291 = vxpose.xlu0.b32.start.end [1/1] (short) %v287_v9, 128  ;;  %v419_v10 = vld [vmem:[%s251_s29] sm:$0x1f]  ;;  %v420_v11 = vld [vmem:[%s251_s29 + $0x8] sm:$0x1f]  ;;  %v421_v12 = vld [vmem:[%s251_s29 + $0x10] sm:$0x1f] }
  0x3b   : > { %1846 = vmatpush.msk.msra.mxu0 %vm520_vm0, %v419_v10  ;;  %1879 = vmatpush.msk.msra.mxu1 %vm520_vm0, %v420_v11  ;;  %v422_v13 = vld [vmem:[%s251_s29 + $0x18] sm:$0x1f]  ;;  %v288_v15 = vld [vmem:[%s244_s25 + $0x8] sm:$0x1f]  ;;  %s1844_s16 = sshll.u32 %s270_s14, 2  ;;  %s2972_s27 = scalar_lea.vmem [#allocation5], %s2312_s8 }
  0x3c   : > { %1912 = vmatpush.msk.msra.mxu2 %vm520_vm0, %v421_v12  ;;  %1945 = vmatpush.msk.msra.mxu3 %vm520_vm0, %v422_v13  ;;  %v290_v14 = vld [vmem:[%s244_s25 + $0x18] sm:$0x1f]  ;;  %s2861_s12 = scalar_lea.vmem [#allocation4], %s1844_s16  ;;  %p1978_p4 = scmp.ne.s32.totalorder %s2148_s18, 0 }
  0xba   : > { %387 = vxpose.xlu1.b32.start.end [1/1] (short) %v290_v14, 128  ;;  %323 = vxpose.xlu0.b32.start.end [1/1] (short) %v288_v15, 128 }
  0xde   : > { %v371_v16 = vpop.trf.xlu1  ;;  %v307_v17 = vpop.trf.xlu0 }
  0xdf   : > { %1847 = vmatmul.msk.f32.vlgmr.msra.gmra.mxu0 %vm423_vm1, %v307_v17  ;;  %1880 = vmatmul.msk.f32.vlgmr.msra.gmra.mxu1 %vm423_vm1, %v307_v17 }
  0xe0   : > { %1913 = vmatmul.msk.f32.vlgmr.msra.gmra.mxu2 %vm423_vm1, %v371_v16  ;;  %1946 = vmatmul.msk.f32.vlgmr.msra.gmra.mxu3 %vm423_vm1, %v371_v16 }
  0xe6   : > { %v372_v18 = vpop.trf.xlu1  ;;  %v308_v19 = vpop.trf.xlu0 }
  0xe7   : > { %1848 = vmatmul.msk.f32.gmra.mxu0 %vm423_vm1, %v308_v19  ;;  %1881 = vmatmul.msk.f32.gmra.mxu1 %vm423_vm1, %v308_v19 }
  0xe8   : > { %1914 = vmatmul.msk.f32.gmra.mxu2 %vm423_vm1, %v372_v18  ;;  %1947 = vmatmul.msk.f32.gmra.mxu3 %vm423_vm1, %v372_v18 }
  0xee   : > { %v373_v20 = vpop.trf.xlu1  ;;  %v309_v21 = vpop.trf.xlu0 }
  0xef   : > { %1849 = vmatmul.msk.f32.gmra.mxu0 %vm423_vm1, %v309_v21  ;;  %1882 = vmatmul.msk.f32.gmra.mxu1 %vm423_vm1, %v309_v21 }
  0xf0   : > { %1915 = vmatmul.msk.f32.gmra.mxu2 %vm423_vm1, %v373_v20  ;;  %1948 = vmatmul.msk.f32.gmra.mxu3 %vm423_vm1, %v373_v20 }
  0xf6   : > { %v374_v22 = vpop.trf.xlu1  ;;  %v310_v23 = vpop.trf.xlu0 }
  0xf7   : > { %1850 = vmatmul.msk.f32.gmra.mxu0 %vm423_vm1, %v310_v23  ;;  %1883 = vmatmul.msk.f32.gmra.mxu1 %vm423_vm1, %v310_v23 }
  0xf8   : > { %1916 = vmatmul.msk.f32.gmra.mxu2 %vm423_vm1, %v374_v22  ;;  %1949 = vmatmul.msk.f32.gmra.mxu3 %vm423_vm1, %v374_v22 }
  0xfe   : > { %v375_v24 = vpop.trf.xlu1  ;;  %v311_v25 = vpop.trf.xlu0 }
  0xff   : > { %1851 = vmatmul.msk.f32.gmra.mxu0 %vm423_vm1, %v311_v25  ;;  %1884 = vmatmul.msk.f32.gmra.mxu1 %vm423_vm1, %v311_v25 }
 0x100   : > { %1917 = vmatmul.msk.f32.gmra.mxu2 %vm423_vm1, %v375_v24  ;;  %1950 = vmatmul.msk.f32.gmra.mxu3 %vm423_vm1, %v375_v24 }
 0x106   : > { %v376_v26 = vpop.trf.xlu1  ;;  %v312_v27 = vpop.trf.xlu0 }
 0x107   : > { %1852 = vmatmul.msk.f32.gmra.mxu0 %vm423_vm1, %v312_v27  ;;  %1885 = vmatmul.msk.f32.gmra.mxu1 %vm423_vm1, %v312_v27 }
 0x108   : > { %1918 = vmatmul.msk.f32.gmra.mxu2 %vm423_vm1, %v376_v26  ;;  %1951 = vmatmul.msk.f32.gmra.mxu3 %vm423_vm1, %v376_v26 }
 0x10e   : > { %v377_v28 = vpop.trf.xlu1  ;;  %v313_v29 = vpop.trf.xlu0 }
 0x10f   : > { %1853 = vmatmul.msk.f32.gmra.mxu0 %vm423_vm1, %v313_v29  ;;  %1886 = vmatmul.msk.f32.gmra.mxu1 %vm423_vm1, %v313_v29 }
 0x110   : > { %1919 = vmatmul.msk.f32.gmra.mxu2 %vm423_vm1, %v377_v28  ;;  %1952 = vmatmul.msk.f32.gmra.mxu3 %vm423_vm1, %v377_v28 }
 0x116   : > { %v378_v30 = vpop.trf.xlu1  ;;  %v314_v31 = vpop.trf.xlu0 }
 0x117   : > { %1854 = vmatmul.msk.f32.gmra.mxu0 %vm423_vm1, %v314_v31  ;;  %1887 = vmatmul.msk.f32.gmra.mxu1 %vm423_vm1, %v314_v31 }
 0x118   : > { %1920 = vmatmul.msk.f32.gmra.mxu2 %vm423_vm1, %v378_v30  ;;  %1953 = vmatmul.msk.f32.gmra.mxu3 %vm423_vm1, %v378_v30 }
 0x11e   : > { %v379_v32 = vpop.trf.xlu1  ;;  %v315_v33 = vpop.trf.xlu0 }
 0x11f   : > { %1855 = vmatmul.msk.f32.gmra.mxu0 %vm423_vm1, %v315_v33  ;;  %1888 = vmatmul.msk.f32.gmra.mxu1 %vm423_vm1, %v315_v33 }
 0x120   : > { %1921 = vmatmul.msk.f32.gmra.mxu2 %vm423_vm1, %v379_v32  ;;  %1954 = vmatmul.msk.f32.gmra.mxu3 %vm423_vm1, %v379_v32 }
 0x126   : > { %v380_v34 = vpop.trf.xlu1  ;;  %v316_v35 = vpop.trf.xlu0 }
 0x127   : > { %1856 = vmatmul.msk.f32.gmra.mxu0 %vm423_vm1, %v316_v35  ;;  %1889 = vmatmul.msk.f32.gmra.mxu1 %vm423_vm1, %v316_v35 }
 0x128   : > { %1922 = vmatmul.msk.f32.gmra.mxu2 %vm423_vm1, %v380_v34  ;;  %1955 = vmatmul.msk.f32.gmra.mxu3 %vm423_vm1, %v380_v34 }
 0x12e   : > { %v381_v36 = vpop.trf.xlu1  ;;  %v317_v37 = vpop.trf.xlu0 }
 0x12f   : > { %1857 = vmatmul.msk.f32.gmra.mxu0 %vm423_vm1, %v317_v37  ;;  %1890 = vmatmul.msk.f32.gmra.mxu1 %vm423_vm1, %v317_v37 }
 0x130   : > { %1923 = vmatmul.msk.f32.gmra.mxu2 %vm423_vm1, %v381_v36  ;;  %1956 = vmatmul.msk.f32.gmra.mxu3 %vm423_vm1, %v381_v36 }
 0x136   : > { %v382_v38 = vpop.trf.xlu1  ;;  %v318_v39 = vpop.trf.xlu0 }
 0x137   : > { %1858 = vmatmul.msk.f32.gmra.mxu0 %vm423_vm1, %v318_v39  ;;  %1891 = vmatmul.msk.f32.gmra.mxu1 %vm423_vm1, %v318_v39 }
 0x138   : > { %1924 = vmatmul.msk.f32.gmra.mxu2 %vm423_vm1, %v382_v38  ;;  %1957 = vmatmul.msk.f32.gmra.mxu3 %vm423_vm1, %v382_v38 }
 0x13e   : > { %v383_v40 = vpop.trf.xlu1  ;;  %v319_v41 = vpop.trf.xlu0 }
 0x13f   : > { %1859 = vmatmul.msk.f32.gmra.mxu0 %vm423_vm1, %v319_v41  ;;  %1892 = vmatmul.msk.f32.gmra.mxu1 %vm423_vm1, %v319_v41 }
 0x140   : > { %1925 = vmatmul.msk.f32.gmra.mxu2 %vm423_vm1, %v383_v40  ;;  %1958 = vmatmul.msk.f32.gmra.mxu3 %vm423_vm1, %v383_v40 }
 0x146   : > { %v384_v42 = vpop.trf.xlu1  ;;  %v320_v43 = vpop.trf.xlu0 }
 0x147   : > { %1860 = vmatmul.msk.f32.gmra.mxu0 %vm423_vm1, %v320_v43  ;;  %1893 = vmatmul.msk.f32.gmra.mxu1 %vm423_vm1, %v320_v43 }
 0x148   : > { %1926 = vmatmul.msk.f32.gmra.mxu2 %vm423_vm1, %v384_v42  ;;  %1959 = vmatmul.msk.f32.gmra.mxu3 %vm423_vm1, %v384_v42 }
 0x14e   : > { %v385_v44 = vpop.trf.xlu1  ;;  %v321_v45 = vpop.trf.xlu0 }
 0x14f   : > { %1861 = vmatmul.msk.f32.gmra.mxu0 %vm423_vm1, %v321_v45  ;;  %1894 = vmatmul.msk.f32.gmra.mxu1 %vm423_vm1, %v321_v45 }
 0x150   : > { %1927 = vmatmul.msk.f32.gmra.mxu2 %vm423_vm1, %v385_v44  ;;  %1960 = vmatmul.msk.f32.gmra.mxu3 %vm423_vm1, %v385_v44 }
 0x156   : > { %v386_v46 = vpop.trf.xlu1  ;;  %v322_v47 = vpop.trf.xlu0 }
 0x157   : > { %1862 = vmatmul.msk.f32.gmra.mxu0 %vm423_vm1, %v322_v47  ;;  %1895 = vmatmul.msk.f32.gmra.mxu1 %vm423_vm1, %v322_v47 }
 0x158   : > { %1928 = vmatmul.msk.f32.gmra.mxu2 %vm423_vm1, %v386_v46  ;;  %1961 = vmatmul.msk.f32.gmra.mxu3 %vm423_vm1, %v386_v46 }
 0x15c   : > { %v2379_v48 = vpop.f32.mrf.mxu0  ;;  %v2381_v49 = vpop.f32.mrf.mxu1 }
 0x15d   : > { %v1246_v50 = vmin.f32 %v2379_v48, %v2381_v49 }
 0x15e   : > { %v403_v51 = vpop.trf.xlu1  ;;  %v339_v52 = vpop.trf.xlu0 }
 0x15f   : > { %1247 = vmin.xlane.f32.xlu2 %v1246_v50  ;;  %1863 = vmatmul.msk.f32.gmra.mxu0 %vm423_vm1, %v339_v52 }
 0x160   : > { %1929 = vmatmul.msk.f32.gmra.mxu2 %vm423_vm1, %v403_v51  ;;  %1962 = vmatmul.msk.f32.gmra.mxu3 %vm423_vm1, %v403_v51 }
 0x161   : > { %1896 = vmatmul.msk.f32.gmra.mxu1 %vm423_vm1, %v339_v52 }
 0x163   : > { %v2389_v53 = vpop.f32.mrf.mxu2  ;;  %v2391_v54 = vpop.f32.mrf.mxu3 }
 0x164   : > { %v2393_v55 = vpop.f32.mrf.mxu0  ;;  %v2395_v56 = vpop.f32.mrf.mxu1  ;;  %v1342_v57 = vmin.f32 %v2389_v53, %v2391_v54 }
 0x165   : > { %v1249_v58 = vmin.f32 %v2393_v55, %v2395_v56 }
 0x166   : > { %v404_v59 = vpop.trf.xlu1  ;;  %v340_v60 = vpop.trf.xlu0 }
 0x167   : > { %1250 = vmin.xlane.f32.xlu2 %v1249_v58  ;;  %1864 = vmatmul.msk.f32.gmra.mxu0 %vm423_vm1, %v340_v60 }
 0x168   : > { %1930 = vmatmul.msk.f32.gmra.mxu2 %vm423_vm1, %v404_v59  ;;  %1963 = vmatmul.msk.f32.gmra.mxu3 %vm423_vm1, %v404_v59 }
 0x169   : > { %1897 = vmatmul.msk.f32.gmra.mxu1 %vm423_vm1, %v340_v60 }
 0x16b   : > { %v2405_v61 = vpop.f32.mrf.mxu2  ;;  %v2407_v62 = vpop.f32.mrf.mxu3 }
 0x16c   : > { %v1155_v63 = vmin.f32 %v2389_v53, %v2405_v61  ;;  %v1192_v0 = vmin.f32 %v2391_v54, %v2407_v62  ;;  %v2413_v1 = vpop.f32.mrf.mxu0  ;;  %v2415_v2 = vpop.f32.mrf.mxu1  ;;  %v1345_v3 = vmin.f32 %v2405_v61, %v2407_v62 }
 0x16d   : > { %v1252_v4 = vmin.f32 %v2413_v1, %v2415_v2 }
 0x16e   : > { %v405_v5 = vpop.trf.xlu1  ;;  %v341_v6 = vpop.trf.xlu0 }
 0x16f   : > { %1253 = vmin.xlane.f32.xlu2 %v1252_v4  ;;  %1865 = vmatmul.msk.f32.gmra.mxu0 %vm423_vm1, %v341_v6 }
 0x170   : > { %1931 = vmatmul.msk.f32.gmra.mxu2 %vm423_vm1, %v405_v5  ;;  %1964 = vmatmul.msk.f32.gmra.mxu3 %vm423_vm1, %v405_v5 }
 0x171   : > { %1898 = vmatmul.msk.f32.gmra.mxu1 %vm423_vm1, %v341_v6 }
 0x173   : > { %v2425_v7 = vpop.f32.mrf.mxu2  ;;  %v2427_v8 = vpop.f32.mrf.mxu3 }
 0x174   : > { %v1156_v9 = vmin.f32 %v1155_v63, %v2425_v7  ;;  %v1193_v10 = vmin.f32 %v1192_v0, %v2427_v8  ;;  %v2431_v11 = vpop.f32.mrf.mxu0  ;;  %v2433_v12 = vpop.f32.mrf.mxu1  ;;  %v1348_v13 = vmin.f32 %v2425_v7, %v2427_v8  ;;  %v1081_v63 = vmin.f32 %v2379_v48, %v2393_v55 }
 0x175   : > { %v1255_v14 = vmin.f32 %v2431_v11, %v2433_v12  ;;  %v1118_v0 = vmin.f32 %v2381_v49, %v2395_v56 }
 0x176   : > { %v406_v15 = vpop.trf.xlu1  ;;  %v342_v16 = vpop.trf.xlu0 }
 0x177   : > { %1256 = vmin.xlane.f32.xlu2 %v1255_v14  ;;  %1866 = vmatmul.msk.f32.gmra.mxu0 %vm423_vm1, %v342_v16 }
 0x178   : > { %1932 = vmatmul.msk.f32.gmra.mxu2 %vm423_vm1, %v406_v15  ;;  %1965 = vmatmul.msk.f32.gmra.mxu3 %vm423_vm1, %v406_v15 }
 0x179   : > { %1899 = vmatmul.msk.f32.gmra.mxu1 %vm423_vm1, %v342_v16 }
 0x17b   : > { %v2443_v17 = vpop.f32.mrf.mxu2  ;;  %v2445_v18 = vpop.f32.mrf.mxu3 }
 0x17c   : > { %v1157_v19 = vmin.f32 %v1156_v9, %v2443_v17  ;;  %v1194_v20 = vmin.f32 %v1193_v10, %v2445_v18  ;;  %v556_v21 = vpop.f32.mrf.mxu0  ;;  %v669_v22 = vpop.f32.mrf.mxu1  ;;  %v1351_v23 = vmin.f32 %v2443_v17, %v2445_v18  ;;  %v1082_v9 = vmin.f32 %v1081_v63, %v2413_v1 }
 0x17d   : > { %v1258_v24 = vmin.f32 %v556_v21, %v669_v22  ;;  %v1119_v10 = vmin.f32 %v1118_v0, %v2415_v2 }
 0x17e   : > { %v407_v25 = vpop.trf.xlu1  ;;  %v343_v26 = vpop.trf.xlu0  ;;  %v1083_v14 = vmin.f32 %v1082_v9, %v2431_v11 }
 0x17f   : > { %1259 = vmin.xlane.f32.xlu2 %v1258_v24  ;;  %1867 = vmatmul.msk.f32.gmra.mxu0 %vm423_vm1, %v343_v26  ;;  %v1120_v48 = vmin.f32 %v1119_v10, %v2433_v12 }
 0x180   : > { %1933 = vmatmul.msk.f32.gmra.mxu2 %vm423_vm1, %v407_v25  ;;  %1966 = vmatmul.msk.f32.gmra.mxu3 %vm423_vm1, %v407_v25  ;;  %v1084_v49 = vmin.f32 %v1083_v14, %v556_v21 }
 0x181   : > { %1900 = vmatmul.msk.f32.gmra.mxu1 %vm423_vm1, %v343_v26  ;;  %v1121_v55 = vmin.f32 %v1120_v48, %v669_v22 }
 0x183   : > { %v2455_v27 = vpop.f32.mrf.mxu2  ;;  %v2457_v28 = vpop.f32.mrf.mxu3 }
 0x184   : > { %v1158_v29 = vmin.f32 %v1157_v19, %v2455_v27  ;;  %v1195_v30 = vmin.f32 %v1194_v20, %v2457_v28  ;;  %v559_v31 = vpop.f32.mrf.mxu0  ;;  %v672_v32 = vpop.f32.mrf.mxu1  ;;  %v1354_v33 = vmin.f32 %v2455_v27, %v2457_v28 }
 0x185   : > { %v1261_v34 = vmin.f32 %v559_v31, %v672_v32  ;;  %v1085_v11 = vmin.f32 %v1084_v49, %v559_v31  ;;  %v1122_v24 = vmin.f32 %v1121_v55, %v672_v32 }
 0x186   : > { %v408_v35 = vpop.trf.xlu1  ;;  %v344_v36 = vpop.trf.xlu0 }
 0x187   : > { %1262 = vmin.xlane.f32.xlu2 %v1261_v34  ;;  %1868 = vmatmul.msk.f32.gmra.mxu0 %vm423_vm1, %v344_v36 }
 0x188   : > { %1934 = vmatmul.msk.f32.gmra.mxu2 %vm423_vm1, %v408_v35  ;;  %1967 = vmatmul.msk.f32.gmra.mxu3 %vm423_vm1, %v408_v35 }
 0x189   : > { %1901 = vmatmul.msk.f32.gmra.mxu1 %vm423_vm1, %v344_v36 }
 0x18b   : > { %v2467_v37 = vpop.f32.mrf.mxu2  ;;  %v2469_v38 = vpop.f32.mrf.mxu3 }
 0x18c   : > { %v1159_v39 = vmin.f32 %v1158_v29, %v2467_v37  ;;  %v1196_v40 = vmin.f32 %v1195_v30, %v2469_v38  ;;  %v562_v41 = vpop.f32.mrf.mxu0  ;;  %v675_v42 = vpop.f32.mrf.mxu1  ;;  %v1357_v43 = vmin.f32 %v2467_v37, %v2469_v38 }
 0x18d   : > { %v1264_v44 = vmin.f32 %v562_v41, %v675_v42  ;;  %v1086_v21 = vmin.f32 %v1085_v11, %v562_v41  ;;  %v1123_v22 = vmin.f32 %v1122_v24, %v675_v42 }
 0x18e   : > { %v409_v45 = vpop.trf.xlu1  ;;  %v345_v46 = vpop.trf.xlu0 }
 0x18f   : > { %1265 = vmin.xlane.f32.xlu2 %v1264_v44  ;;  %1869 = vmatmul.msk.f32.gmra.mxu0 %vm423_vm1, %v345_v46 }
 0x190   : > { %1935 = vmatmul.msk.f32.gmra.mxu2 %vm423_vm1, %v409_v45  ;;  %1968 = vmatmul.msk.f32.gmra.mxu3 %vm423_vm1, %v409_v45 }
 0x191   : > { %1902 = vmatmul.msk.f32.gmra.mxu1 %vm423_vm1, %v345_v46 }
 0x193   : > { %v2479_v47 = vpop.f32.mrf.mxu2  ;;  %v2481_v50 = vpop.f32.mrf.mxu3 }
 0x194   : > { %v1160_v51 = vmin.f32 %v1159_v39, %v2479_v47  ;;  %v1197_v52 = vmin.f32 %v1196_v40, %v2481_v50  ;;  %v565_v58 = vpop.f32.mrf.mxu0  ;;  %v678_v59 = vpop.f32.mrf.mxu1  ;;  %v1360_v60 = vmin.f32 %v2479_v47, %v2481_v50 }
 0x195   : > { %v1267_v4 = vmin.f32 %v565_v58, %v678_v59  ;;  %v1087_v29 = vmin.f32 %v1086_v21, %v565_v58  ;;  %v1124_v30 = vmin.f32 %v1123_v22, %v678_v59 }
 0x196   : > { %v410_v5 = vpop.trf.xlu1  ;;  %v346_v6 = vpop.trf.xlu0 }
 0x197   : > { %1268 = vmin.xlane.f32.xlu2 %v1267_v4  ;;  %1870 = vmatmul.msk.f32.gmra.mxu0 %vm423_vm1, %v346_v6 }
 0x198   : > { %1936 = vmatmul.msk.f32.gmra.mxu2 %vm423_vm1, %v410_v5  ;;  %1969 = vmatmul.msk.f32.gmra.mxu3 %vm423_vm1, %v410_v5 }
 0x199   : > { %1903 = vmatmul.msk.f32.gmra.mxu1 %vm423_vm1, %v346_v6 }
 0x19b   : > { %v2499_v56 = vpop.f32.mrf.mxu2  ;;  %v2501_v1 = vpop.f32.mrf.mxu3 }
 0x19c   : > { %v1161_v2 = vmin.f32 %v1160_v51, %v2499_v56  ;;  %v1198_v15 = vmin.f32 %v1197_v52, %v2501_v1  ;;  %v568_v16 = vpop.f32.mrf.mxu0  ;;  %v681_v19 = vpop.f32.mrf.mxu1  ;;  %v1363_v20 = vmin.f32 %v2499_v56, %v2501_v1 }
 0x19d   : > { %v1270_v12 = vmin.f32 %v568_v16, %v681_v19  ;;  %v1088_v34 = vmin.f32 %v1087_v29, %v568_v16  ;;  %v1125_v35 = vmin.f32 %v1124_v30, %v681_v19 }
 0x19e   : > { %v411_v25 = vpop.trf.xlu1  ;;  %v347_v26 = vpop.trf.xlu0 }
 0x19f   : > { %1271 = vmin.xlane.f32.xlu2 %v1270_v12  ;;  %1871 = vmatmul.msk.f32.gmra.mxu0 %vm423_vm1, %v347_v26 }
 0x1a0   : > { %1937 = vmatmul.msk.f32.gmra.mxu2 %vm423_vm1, %v411_v25  ;;  %1970 = vmatmul.msk.f32.gmra.mxu3 %vm423_vm1, %v411_v25 }
 0x1a1   : > { %1904 = vmatmul.msk.f32.gmra.mxu1 %vm423_vm1, %v347_v26 }
 0x1a3   : > { %v2511_v31 = vpop.f32.mrf.mxu2  ;;  %v2513_v32 = vpop.f32.mrf.mxu3 }
 0x1a4   : > { %v1162_v36 = vmin.f32 %v1161_v2, %v2511_v31  ;;  %v1199_v39 = vmin.f32 %v1198_v15, %v2513_v32  ;;  %v571_v40 = vpop.f32.mrf.mxu0  ;;  %v684_v41 = vpop.f32.mrf.mxu1  ;;  %v1366_v42 = vmin.f32 %v2511_v31, %v2513_v32 }
 0x1a5   : > { %v1089_v44 = vmin.f32 %v1088_v34, %v571_v40  ;;  %v1126_v45 = vmin.f32 %v1125_v35, %v684_v41  ;;  %v1273_v46 = vmin.f32 %v571_v40, %v684_v41 }
 0x1a6   : > { %v412_v51 = vpop.trf.xlu1  ;;  %v348_v52 = vpop.trf.xlu0 }
 0x1a7   : > { %1274 = vmin.xlane.f32.xlu2 %v1273_v46  ;;  %1872 = vmatmul.msk.f32.gmra.mxu0 %vm423_vm1, %v348_v52 }
 0x1a8   : > { %1938 = vmatmul.msk.f32.gmra.mxu2 %vm423_vm1, %v412_v51  ;;  %1971 = vmatmul.msk.f32.gmra.mxu3 %vm423_vm1, %v412_v51 }
 0x1a9   : > { %1905 = vmatmul.msk.f32.gmra.mxu1 %vm423_vm1, %v348_v52 }
 0x1ab   : > { %v2523_v58 = vpop.f32.mrf.mxu2  ;;  %v2525_v59 = vpop.f32.mrf.mxu3 }
 0x1ac   : > { %v1163_v63 = vmin.f32 %v1162_v36, %v2523_v58  ;;  %v1200_v0 = vmin.f32 %v1199_v39, %v2525_v59  ;;  %v574_v4 = vpop.f32.mrf.mxu0  ;;  %v687_v5 = vpop.f32.mrf.mxu1 }
 0x1ad   : > { %v1090_v9 = vmin.f32 %v1089_v44, %v574_v4  ;;  %v1127_v10 = vmin.f32 %v1126_v45, %v687_v5  ;;  %v1276_v14 = vmin.f32 %v574_v4, %v687_v5 }
 0x1ae   : > { %v413_v48 = vpop.trf.xlu1  ;;  %v349_v49 = vpop.trf.xlu0 }
 0x1af   : > { %1277 = vmin.xlane.f32.xlu2 %v1276_v14  ;;  %1873 = vmatmul.msk.f32.gmra.mxu0 %vm423_vm1, %v349_v49 }
 0x1b0   : > { %1939 = vmatmul.msk.f32.gmra.mxu2 %vm423_vm1, %v413_v48  ;;  %1972 = vmatmul.msk.f32.gmra.mxu3 %vm423_vm1, %v413_v48 }
 0x1b1   : > { %1906 = vmatmul.msk.f32.gmra.mxu1 %vm423_vm1, %v349_v49 }
 0x1b3   : > { %v2535_v55 = vpop.f32.mrf.mxu2  ;;  %v2537_v2 = vpop.f32.mrf.mxu3 }
 0x1b4   : > { %v1164_v15 = vmin.f32 %v1163_v63, %v2535_v55  ;;  %v1201_v16 = vmin.f32 %v1200_v0, %v2537_v2  ;;  %v577_v19 = vpop.f32.mrf.mxu0  ;;  %v690_v11 = vpop.f32.mrf.mxu1 }
 0x1b5   : > { %v1091_v12 = vmin.f32 %v1090_v9, %v577_v19  ;;  %v1128_v25 = vmin.f32 %v1127_v10, %v690_v11  ;;  %v1279_v26 = vmin.f32 %v577_v19, %v690_v11 }
 0x1b6   : > { %v414_v21 = vpop.trf.xlu1  ;;  %v350_v22 = vpop.trf.xlu0 }
 0x1b7   : > { %1280 = vmin.xlane.f32.xlu2 %v1279_v26  ;;  %1874 = vmatmul.msk.f32.gmra.mxu0 %vm423_vm1, %v350_v22 }
 0x1b8   : > { %1940 = vmatmul.msk.f32.gmra.mxu2 %vm423_vm1, %v414_v21  ;;  %1973 = vmatmul.msk.f32.gmra.mxu3 %vm423_vm1, %v414_v21 }
 0x1b9   : > { %1907 = vmatmul.msk.f32.gmra.mxu1 %vm423_vm1, %v350_v22 }
 0x1bb   : > { %v2547_v29 = vpop.f32.mrf.mxu2  ;;  %v2549_v30 = vpop.f32.mrf.mxu3 }
 0x1bc   : > { %v1165_v34 = vmin.f32 %v1164_v15, %v2547_v29  ;;  %v1202_v35 = vmin.f32 %v1201_v16, %v2549_v30  ;;  %v580_v36 = vpop.f32.mrf.mxu0  ;;  %v693_v39 = vpop.f32.mrf.mxu1 }
 0x1bd   : > { %v1092_v41 = vmin.f32 %v1091_v12, %v580_v36  ;;  %v1129_v44 = vmin.f32 %v1128_v25, %v693_v39  ;;  %v1282_v45 = vmin.f32 %v580_v36, %v693_v39 }
 0x1be   : > { %v415_v46 = vpop.trf.xlu1  ;;  %v351_v51 = vpop.trf.xlu0 }
 0x1bf   : > { %1283 = vmin.xlane.f32.xlu2 %v1282_v45  ;;  %1875 = vmatmul.msk.f32.gmra.mxu0 %vm423_vm1, %v351_v51 }
 0x1c0   : > { %1941 = vmatmul.msk.f32.gmra.mxu2 %vm423_vm1, %v415_v46  ;;  %1974 = vmatmul.msk.f32.gmra.mxu3 %vm423_vm1, %v415_v46 }
 0x1c1   : > { %1908 = vmatmul.msk.f32.gmra.mxu1 %vm423_vm1, %v351_v51 }
 0x1c3   : > { %v2559_v52 = vpop.f32.mrf.mxu2  ;;  %v2561_v63 = vpop.f32.mrf.mxu3 }
 0x1c4   : > { %v1166_v0 = vmin.f32 %v1165_v34, %v2559_v52  ;;  %v1203_v4 = vmin.f32 %v1202_v35, %v2561_v63  ;;  %v583_v5 = vpop.f32.mrf.mxu0  ;;  %v696_v9 = vpop.f32.mrf.mxu1 }
 0x1c5   : > { %v1093_v14 = vmin.f32 %v1092_v41, %v583_v5  ;;  %v1130_v48 = vmin.f32 %v1129_v44, %v696_v9  ;;  %v1285_v49 = vmin.f32 %v583_v5, %v696_v9 }
 0x1c6   : > { %v416_v15 = vpop.trf.xlu1  ;;  %v352_v16 = vpop.trf.xlu0 }
 0x1c7   : > { %1286 = vmin.xlane.f32.xlu2 %v1285_v49  ;;  %1876 = vmatmul.msk.f32.gmra.mxu0 %vm423_vm1, %v352_v16 }
 0x1c8   : > { %1942 = vmatmul.msk.f32.gmra.mxu2 %vm423_vm1, %v416_v15  ;;  %1975 = vmatmul.msk.f32.gmra.mxu3 %vm423_vm1, %v416_v15 }
 0x1c9   : > { %1909 = vmatmul.msk.f32.gmra.mxu1 %vm423_vm1, %v352_v16 }
 0x1cb   : > { %v2571_v19 = vpop.f32.mrf.mxu2  ;;  %v2573_v11 = vpop.f32.mrf.mxu3 }
 0x1cc   : > { %v1167_v12 = vmin.f32 %v1166_v0, %v2571_v19  ;;  %v1204_v25 = vmin.f32 %v1203_v4, %v2573_v11  ;;  %v586_v26 = vpop.f32.mrf.mxu0  ;;  %v699_v21 = vpop.f32.mrf.mxu1 }
 0x1cd   : > { %v1094_v34 = vmin.f32 %v1093_v14, %v586_v26  ;;  %v1131_v35 = vmin.f32 %v1130_v48, %v699_v21  ;;  %v1288_v36 = vmin.f32 %v586_v26, %v699_v21 }
 0x1ce   : > { %v417_v39 = vpop.trf.xlu1  ;;  %v353_v41 = vpop.trf.xlu0 }
 0x1cf   : > { %1289 = vmin.xlane.f32.xlu2 %v1288_v36  ;;  %1877 = vmatmul.msk.f32.gmra.mxu0 %vm423_vm1, %v353_v41 }
 0x1d0   : > { %1943 = vmatmul.msk.f32.gmra.mxu2 %vm423_vm1, %v417_v39  ;;  %1976 = vmatmul.msk.f32.gmra.mxu3 %vm423_vm1, %v417_v39 }
 0x1d1   : > { %1910 = vmatmul.msk.f32.gmra.mxu1 %vm423_vm1, %v353_v41 }
 0x1d2   : > { %v2583_v44 = vpop.xlane.xlu2 %1247 }
 0x1d3   : > { %v914_v45 = vpop.f32.mrf.mxu2  ;;  %v1027_v46 = vpop.f32.mrf.mxu3 }
 0x1d4   : > { %v1168_v51 = vmin.f32 %v1167_v12, %v914_v45  ;;  %v1205_v0 = vmin.f32 %v1204_v25, %v1027_v46  ;;  %v589_v4 = vpop.f32.mrf.mxu0  ;;  %v702_v5 = vpop.f32.mrf.mxu1 }
 0x1d5   : > { %v1095_v9 = vmin.f32 %v1094_v34, %v589_v4  ;;  %v1132_v14 = vmin.f32 %v1131_v35, %v702_v5  ;;  %v1291_v48 = vmin.f32 %v589_v4, %v702_v5 }
 0x1d6   : > { %v418_v49 = vpop.trf.xlu1  ;;  %v354_v15 = vpop.trf.xlu0 }
 0x1d7   : > { %1292 = vmin.xlane.f32.xlu2 %v1291_v48  ;;  %1878 = vmatmul.msk.f32.gmra.mxu0 %vm423_vm1, %v354_v15 }
 0x1d8   : > { %1944 = vmatmul.msk.f32.gmra.mxu2 %vm423_vm1, %v418_v49  ;;  %1977 = vmatmul.msk.f32.gmra.mxu3 %vm423_vm1, %v418_v49 }
 0x1d9   : > { %1911 = vmatmul.msk.f32.gmra.mxu1 %vm423_vm1, %v354_v15 }
 0x1da   : > { %v2589_v16 = vpop.xlane.xlu2 %1250 }
 0x1db   : > { %v2591_v12 = vpop.f32.mrf.mxu2  ;;  %v2593_v25 = vpop.f32.mrf.mxu3 }
 0x1dc   : > { %v1169_v26 = vmin.f32 %v1168_v51, %v2591_v12  ;;  %v1206_v21 = vmin.f32 %v1205_v0, %v2593_v25  ;;  %v592_v34 = vpop.f32.mrf.mxu0 }
 0x1dd   : > { %v1096_v36 = vmin.f32 %v1095_v9, %v592_v34 }
 0x1de   : > { %v705_v39 = vpop.f32.mrf.mxu1 }
 0x1df   : > { %v1133_v41 = vmin.f32 %v1132_v14, %v705_v39  ;;  %v1294_v4 = vmin.f32 %v592_v34, %v705_v39 }
 0x1e1   : > { %1295 = vmin.xlane.f32.xlu2 %v1294_v4 }
 0x1e2   : > { %v2599_v5 = vpop.xlane.xlu2 %1253 }
 0x1e3   : > { %v920_v48 = vpop.f32.mrf.mxu2  ;;  %v1033_v49 = vpop.f32.mrf.mxu3 }
 0x1e4   : > { %v1170_v15 = vmin.f32 %v1169_v26, %v920_v48  ;;  %v1207_v22 = vmin.f32 %v1206_v21, %v1033_v49  ;;  %v595_v10 = vpop.f32.mrf.mxu0  ;;  %v1390_v7 = vmin.f32 %v920_v48, %v1033_v49 }
 0x1e5   : > { %v1097_v40 = vmin.f32 %v1096_v36, %v595_v10 }
 0x1e6   : > { %v708_v51 = vpop.f32.mrf.mxu1 }
 0x1e7   : > { %v1134_v24 = vmin.f32 %v1133_v41, %v708_v51  ;;  %v1297_v21 = vmin.f32 %v595_v10, %v708_v51 }
 0x1e9   : > { %1343 = vmin.xlane.f32.xlu2 %v1342_v57  ;;  %1298 = vmin.xlane.f32.xlu0 %v1297_v21 }
 0x1ea   : > { %v2604_v0 = vpop.xlane.xlu2 %1256 }
 0x1eb   : > { %v2606_v9 = vpop.f32.mrf.mxu2  ;;  %v2608_v14 = vpop.f32.mrf.mxu3 }
 0x1ec   : > { %v1171_v34 = vmin.f32 %v1170_v15, %v2606_v9  ;;  %v1208_v39 = vmin.f32 %v1207_v22, %v2608_v14  ;;  %v598_v26 = vpop.f32.mrf.mxu0 }
 0x1ed   : > { %v2614_v36 = vmin.f32 %v1097_v40, %v598_v26 }
 0x1ee   : > { %v711_v41 = vpop.f32.mrf.mxu1 }
 0x1ef   : > { %v2616_v4 = vmin.f32 %v1134_v24, %v711_v41  ;;  %v1300_v53 = vmin.f32 %v598_v26, %v711_v41  ;;  %v1384_v24 = vmin.f32 %v914_v45, %v1027_v46 }
 0x1f1   : > { %1346 = vmin.xlane.f32.xlu2 %v1345_v3  ;;  %1301 = vmin.xlane.f32.xlu1 %v1300_v53 }
 0x1f2   : > { %v2621_v54 = vpop.xlane.xlu2 %1259 }
 0x1f3   : > { %3055 = vst [vmem:[#allocation7_spill] sm:$0xff] %v2621_v54  ;;  %v926_v57 = vpop.f32.mrf.mxu2  ;;  %v1039_v15 = vpop.f32.mrf.mxu3 }
 0x1f4   : > { %v1172_v22 = vmin.f32 %v1171_v34, %v926_v57  ;;  %v1209_v35 = vmin.f32 %v1208_v39, %v1039_v15  ;;  %v2623_v6 = vpop.f32.mrf.mxu0  ;;  %v1396_v53 = vmin.f32 %v926_v57, %v1039_v15 }
 0x1f6   : > { %v2625_v40 = vpop.f32.mrf.mxu1 }
 0x1f9   : > { %1349 = vmin.xlane.f32.xlu2 %v1348_v13  ;;  %1385 = vmin.xlane.f32.xlu1 %v1384_v24 }
 0x1fa   : > { %v2630_v61 = vpop.xlane.xlu2 %1262 }
 0x1fb   : > { %3056 = vst [vmem:[#allocation8_spill] sm:$0xff] %v2630_v61  ;;  %v2632_v62 = vpop.f32.mrf.mxu2  ;;  %v2634_v3 = vpop.f32.mrf.mxu3 }
 0x1fc   : > { %v1173_v34 = vmin.f32 %v1172_v22, %v2632_v62  ;;  %v1210_v39 = vmin.f32 %v1209_v35, %v2634_v3  ;;  %v2638_v10 = vpop.f32.mrf.mxu0 }
 0x1fe   : > { %v2642_v46 = vpop.f32.mrf.mxu1 }
 0x201   : > { %1352 = vmin.xlane.f32.xlu2 %v1351_v23  ;;  %1391 = vmin.xlane.f32.xlu1 %v1390_v7 }
 0x202   : > { %v2647_v8 = vpop.xlane.xlu2 %1265 }
 0x203   : > { %3057 = vst [vmem:[#allocation9_spill] sm:$0xff] %v2647_v8  ;;  %v932_v13 = vpop.f32.mrf.mxu2  ;;  %v1045_v51 = vpop.f32.mrf.mxu3 }
 0x204   : > { %v2649_v26 = vmin.f32 %v1173_v34, %v932_v13  ;;  %v2651_v35 = vmin.f32 %v1210_v39, %v1045_v51  ;;  %v2653_v21 = vpop.f32.mrf.mxu0  ;;  %v1402_v41 = vmin.f32 %v932_v13, %v1045_v51 }
 0x206   : > { %v2655_v22 = vpop.f32.mrf.mxu1  ;;  %1403 = vmin.xlane.f32.xlu0 %v1402_v41 }
 0x209   : > { %1355 = vmin.xlane.f32.xlu2 %v1354_v33  ;;  %1397 = vmin.xlane.f32.xlu1 %v1396_v53 }
 0x20a   : > { %v2660_v17 = vpop.xlane.xlu2 %1268 }
 0x20b   : > { %3058 = vst [vmem:[#allocation10_spill] sm:$0xff] %v2660_v17  ;;  %v2662_v18 = vpop.f32.mrf.mxu2  ;;  %v2664_v23 = vpop.f32.mrf.mxu3 }
 0x20c   : > { %v2666_v48 = vpop.f32.mrf.mxu0  ;;  %v1405_v49 = vmin.f32 %v2662_v18, %v2664_v23 }
 0x20e   : > { %v2670_v57 = vpop.f32.mrf.mxu1 }
 0x211   : > { %1358 = vmin.xlane.f32.xlu2 %v1357_v43  ;;  %1406 = vmin.xlane.f32.xlu1 %v1405_v49 }
 0x212   : > { %v2675_v27 = vpop.xlane.xlu2 %1271 }
 0x213   : > { %3059 = vst [vmem:[#allocation11_spill] sm:$0xff] %v2675_v27  ;;  %v2677_v28 = vpop.f32.mrf.mxu2  ;;  %v2679_v33 = vpop.f32.mrf.mxu3 }
 0x214   : > { %v2681_v15 = vpop.f32.mrf.mxu0 }
 0x215   : > { %3060 = vst [vmem:[#allocation12_spill] sm:$0xff] %v2681_v15 }
 0x216   : > { %v2685_v34 = vpop.f32.mrf.mxu1 }
 0x219   : > { %1361 = vmin.xlane.f32.xlu2 %v1360_v60 }
 0x21a   : > { %v2690_v37 = vpop.xlane.xlu2 %1274 }
 0x21b   : > { %3061 = vst [vmem:[#allocation13_spill] sm:$0xff] %v2690_v37  ;;  %v2692_v38 = vpop.f32.mrf.mxu2  ;;  %v2694_v43 = vpop.f32.mrf.mxu3  ;;  %v3066_v37 = vmin.f32 %v2535_v55, %v2537_v2  ;;  %v1136_v55 = vmin.f32 %v2616_v4, %v2625_v40 }
 0x21c   : > { %v2696_v39 = vpop.f32.mrf.mxu0  ;;  %v1411_v7 = vmin.f32 %v2692_v38, %v2694_v43 }
 0x21e   : > { %v2700_v13 = vpop.f32.mrf.mxu1  ;;  %1412 = vmin.xlane.f32.xlu0 %v1411_v7 }
 0x221   : > { %1364 = vmin.xlane.f32.xlu2 %v1363_v20 }
 0x222   : > { %v2705_v47 = vpop.xlane.xlu2 %1277 }
 0x223   : > { %3062 = vst [vmem:[#allocation14_spill] sm:$0xff] %v2705_v47  ;;  %v2707_v50 = vpop.f32.mrf.mxu2  ;;  %v2709_v60 = vpop.f32.mrf.mxu3 }
 0x224   : > { %v2711_v51 = vpop.f32.mrf.mxu0  ;;  %v1414_v41 = vmin.f32 %v2707_v50, %v2709_v60 }
 0x226   : > { %v2715_v53 = vpop.f32.mrf.mxu1  ;;  %1415 = vmin.xlane.f32.xlu1 %v1414_v41  ;;  %v3064_v41 = vmin.f32 %v2523_v58, %v2525_v59 }
 0x229   : > { %1367 = vmin.xlane.f32.xlu2 %v1366_v42 }
 0x22a   : > { %v2720_v56 = vpop.xlane.xlu2 %1280 }
 0x22b   : > { %3063 = vst [vmem:[#allocation15_spill] sm:$0xff] %v2720_v56  ;;  %v2722_v1 = vpop.f32.mrf.mxu2  ;;  %v2724_v20 = vpop.f32.mrf.mxu3 }
 0x22c   : > { %v2726_v49 = vpop.f32.mrf.mxu0 }
 0x22e   : > { %v2730_v24 = vpop.f32.mrf.mxu1 }
 0x231   : > { %1370 = vmin.xlane.f32.xlu2 %v3064_v41 }
 0x232   : > { %v2735_v45 = vpop.xlane.xlu2 %1283 }
 0x233   : > { %3065 = vst [vmem:[#allocation16_spill] sm:$0xff] %v2735_v45  ;;  %v950_v31 = vpop.f32.mrf.mxu2  ;;  %v1063_v32 = vpop.f32.mrf.mxu3  ;;  %v1099_v45 = vmin.f32 %v2614_v36, %v2623_v6 }
 0x234   : > { %v2737_v42 = vpop.f32.mrf.mxu0  ;;  %v1420_v56 = vmin.f32 %v950_v31, %v1063_v32 }
 0x235   : > { %v1100_v2 = vmin.f32 %v1099_v45, %v2638_v10 }
 0x236   : > { %v2739_v47 = vpop.f32.mrf.mxu1  ;;  %1421 = vmin.xlane.f32.xlu0 %v1420_v56 }
 0x237   : > { %v1101_v56 = vmin.f32 %v1100_v2, %v2653_v21 }
 0x239   : > { %1373 = vmin.xlane.f32.xlu2 %v3066_v37  ;;  %v1137_v37 = vmin.f32 %v1136_v55, %v2642_v46  ;;  %v1102_v61 = vmin.f32 %v1101_v56, %v2666_v48  ;;  %v1212_v56 = vmin.f32 %v2651_v35, %v2664_v23 }
 0x23a   : > { %v2744_v7 = vpop.xlane.xlu2 %1286 }
 0x23b   : > { %3067 = vst [vmem:[#allocation17_spill] sm:$0xff] %v2744_v7  ;;  %v2746_v27 = vpop.f32.mrf.mxu2  ;;  %v2748_v58 = vpop.f32.mrf.mxu3  ;;  %v3068_v7 = vmin.f32 %v2547_v29, %v2549_v30  ;;  %v1138_v36 = vmin.f32 %v1137_v37, %v2655_v22  ;;  %v1103_v29 = vmin.f32 %v1102_v61, %v2681_v15  ;;  %v1175_v37 = vmin.f32 %v2649_v26, %v2662_v18 }
 0x23c   : > { %v2750_v59 = vpop.f32.mrf.mxu0  ;;  %v1423_v41 = vmin.f32 %v2746_v27, %v2748_v58 }
 0x23d   : > { %v1139_v55 = vmin.f32 %v1138_v36, %v2670_v57  ;;  %v1104_v2 = vmin.f32 %v1103_v29, %v2696_v39  ;;  %v3070_v36 = vmin.f32 %v2559_v52, %v2561_v63  ;;  %v1176_v61 = vmin.f32 %v1175_v37, %v2677_v28 }
 0x23e   : > { %v2756_v17 = vpop.f32.mrf.mxu1  ;;  %1424 = vmin.xlane.f32.xlu1 %v1423_v41 }
 0x23f   : > { %v1105_v45 = vmin.f32 %v1104_v2, %v2711_v51  ;;  %v1177_v23 = vmin.f32 %v1176_v61, %v2692_v38 }
 0x241   : > { %1376 = vmin.xlane.f32.xlu2 %v3068_v7  ;;  %v1140_v7 = vmin.f32 %v1139_v55, %v2685_v34  ;;  %v1213_v55 = vmin.f32 %v1212_v56, %v2679_v33  ;;  %v1106_v26 = vmin.f32 %v1105_v45, %v2726_v49  ;;  %v1178_v56 = vmin.f32 %v1177_v23, %v2707_v50 }
 0x242   : > { %v2766_v8 = vpop.xlane.xlu2 %1289  ;;  %v3072_v50 = vmin.f32 %v2571_v19, %v2573_v11 }
 0x243   : > { %3069 = vst [vmem:[#allocation18_spill] sm:$0xff] %v2766_v8  ;;  %v2770_v41 = vpop.f32.mrf.mxu2  ;;  %v2772_v54 = vpop.f32.mrf.mxu3  ;;  %v1141_v8 = vmin.f32 %v1140_v7, %v2700_v13  ;;  %v1214_v7 = vmin.f32 %v1213_v55, %v2694_v43  ;;  %v1107_v37 = vmin.f32 %v1106_v26, %v2737_v42  ;;  %v1179_v43 = vmin.f32 %v1178_v56, %v2722_v1 }
 0x244   : > { %v2774_v4 = vpop.f32.mrf.mxu0 }
 0x245   : > { %v1142_v29 = vmin.f32 %v1141_v8, %v2715_v53  ;;  %v1108_v38 = vmin.f32 %v1107_v37, %v2750_v59 }
 0x246   : > { %v2780_v30 = vpop.f32.mrf.mxu1 }
 0x247   : > { %v1143_v63 = vmin.f32 %v1142_v29, %v2730_v24  ;;  %v1109_v29 = vmin.f32 %v1108_v38, %v2774_v4 }
 0x249   : > { %1379 = vmin.xlane.f32.xlu2 %v3070_v36  ;;  %v1215_v36 = vmin.f32 %v1214_v7, %v2709_v60  ;;  %v1144_v45 = vmin.f32 %v1143_v63, %v2739_v47  ;;  %v1180_v60 = vmin.f32 %v1179_v43, %v950_v31 }
 0x24a   : > { %v2795_v15 = vpop.xlane.xlu2 %1292 }
 0x24b   : > { %3071 = vst [vmem:[#allocation19_spill] sm:$0xff] %v2795_v15  ;;  %v959_v18 = vpop.f32.mrf.mxu2  ;;  %v1072_v35 = vpop.f32.mrf.mxu3  ;;  %v1216_v61 = vmin.f32 %v1215_v36, %v2724_v20  ;;  %v1145_v55 = vmin.f32 %v1144_v45, %v2756_v17  ;;  %v1181_v37 = vmin.f32 %v1180_v60, %v2746_v27 }
 0x24c   : > { %v2801_v2 = vpop.f32.mrf.mxu0  ;;  %v1429_v52 = vmin.f32 %v959_v18, %v1072_v35 }
 0x24d   : > { %v1217_v26 = vmin.f32 %v1216_v61, %v1063_v32  ;;  %v1146_v23 = vmin.f32 %v1145_v55, %v2780_v30  ;;  %v1110_v7 = vmin.f32 %v1109_v29, %v2801_v2  ;;  %v1182_v31 = vmin.f32 %v1181_v37, %v2770_v41 }
 0x24e   : > { %v2807_v8 = vpop.f32.mrf.mxu1  ;;  %1430 = vmin.xlane.f32.xlu0 %v1429_v52 }
 0x24f   : > { %v1218_v56 = vmin.f32 %v1217_v26, %v2748_v58  ;;  %v1147_v19 = vmin.f32 %v1146_v23, %v2807_v8  ;;  %v1183_v55 = vmin.f32 %v1182_v31, %v959_v18  ;;  %v3073_v26 = vmin.f32 %v2591_v12, %v2593_v25 }
 0x251   : > { %1382 = vmin.xlane.f32.xlu2 %v3072_v50  ;;  %v1219_v32 = vmin.f32 %v1218_v56, %v2772_v54 }
 0x253   : > { %v962_v52 = vpop.f32.mrf.mxu2  ;;  %v1075_v63 = vpop.f32.mrf.mxu3  ;;  %v1220_v29 = vmin.f32 %v1219_v32, %v1072_v35 }
 0x254   : > { %v2822_v36 = vpop.xlane.xlu2 %1295  ;;  %v2824_v45 = vpop.f32.mrf.mxu0  ;;  %v1432_v38 = vmin.f32 %v962_v52, %v1075_v63  ;;  %v1184_v23 = vmin.f32 %v1183_v55, %v962_v52 }
 0x255   : > { %v1111_v11 = vmin.f32 %v1110_v7, %v2824_v45  ;;  %v1221_v7 = vmin.f32 %v1220_v29, %v1075_v63  ;;  %v1240_v29 = vlaneseq }
 0x256   : > { %v2830_v43 = vpop.f32.mrf.mxu1  ;;  %1433 = vmin.xlane.f32.xlu1 %v1432_v38 }
 0x257   : > { %v1112_v61 = vrot.slane %v1111_v11, 4  ;;  %v1148_v27 = vmin.f32 %v1147_v19, %v2830_v43  ;;  %vm2854_vm3 = vcmp.lt.s32.totalorder %v1240_v29, 256  ;;  %v3083_v29 = vld [vmem:[#allocation10_spill] sm:$0xff] }
 0x259   : > { %v1113_v50 = vmin.f32 %v1111_v11, %v1112_v61  ;;  %v1149_v60 = vrot.slane %v1148_v27, 4  ;;  %1388 = vmin.xlane.f32.xlu2 %v3073_v26 }
 0x25b   : > { %v1114_v37 = vrot.slane %v1113_v50, 2  ;;  %v1150_v56 = vmin.f32 %v1148_v27, %v1149_v60  ;;  %v2838_v38 = vpop.f32.mrf.mxu2  ;;  %v2840_v15 = vpop.f32.mrf.mxu3  ;;  %v3074_v60 = vmin.f32 %v2606_v9, %v2608_v14 }
 0x25c   : > { %v1185_v19 = vmin.f32 %v1184_v23, %v2838_v38  ;;  %v1222_v18 = vmin.f32 %v1221_v7, %v2840_v15  ;;  %v2846_v11 = vpop.xlane.xlu2 %1343 }
 0x25d   : > { %v1115_v12 = vmin.f32 %v1113_v50, %v1114_v37  ;;  %v1151_v25 = vrot.slane %v1150_v56, 2 }
 0x25e   : > { %v1186_v31 = vrot.slane %v1185_v19, 4  ;;  %v1223_v52 = vrot.slane %v1222_v18, 4 }
 0x25f   : > { %v1152_v63 = vmin.f32 %v1150_v56, %v1151_v25  ;;  %v1116_v27 = vrot.slane %v1115_v12, 1 }
 0x260   : > { %v1187_v32 = vmin.f32 %v1185_v19, %v1186_v31  ;;  %v1224_v61 = vmin.f32 %v1222_v18, %v1223_v52  ;;  %v1303_v18 = vmin.f32 %v2623_v6, %v2625_v40  ;;  %v3077_v6 = vmin.f32 %v2632_v62, %v2634_v3 }
 0x261   : > { %v1153_v55 = vrot.slane %v1152_v63, 1  ;;  %1394 = vmin.xlane.f32.xlu2 %v3074_v60  ;;  %v1117_v58 = vmin.f32 %v1115_v12, %v1116_v27  ;;  %v1309_v27 = vmin.f32 %v2653_v21, %v2655_v22  ;;  %v1312_v62 = vmin.f32 %v2666_v48, %v2670_v57  ;;  %v1299_v21 = vpop.xlane.xlu0 %1298  ;;  %v3080_v22 = vld [vmem:[#allocation7_spill] sm:$0xff]  ;;  %v3081_v57 = vld [vmem:[#allocation8_spill] sm:$0xff] }
 0x262   : > { %v1188_v26 = vrot.slane %v1187_v32, 2  ;;  %v1225_v23 = vrot.slane %v1224_v61, 2  ;;  %v1324_v60 = vmin.f32 %v2726_v49, %v2730_v24  ;;  %v3088_v49 = vld [vmem:[#allocation15_spill] sm:$0xff] }
 0x263   : > { %v1154_v7 = vmin.f32 %v1152_v63, %v1153_v55 }
 0x264   : > { %v1189_v50 = vmin.f32 %v1187_v32, %v1188_v26  ;;  %v1226_v37 = vmin.f32 %v1224_v61, %v1225_v23  ;;  %v2852_v35 = vpop.xlane.xlu2 %1346  ;;  %v1302_v48 = vpop.xlane.xlu1 %1301  ;;  %v3085_v26 = vld [vmem:[#allocation11_spill] sm:$0xff]  ;;  %v3086_v23 = vld [vmem:[#allocation13_spill] sm:$0xff] }
 0x265   : > { %v1233_v56 = vrot.slane %v1154_v7, 7 }
 0x266   : > { %v1190_v9 = vrot.slane %v1189_v50, 1  ;;  %v1227_v14 = vrot.slane %v1226_v37, 1 }
 0x267   : > { %v1236_v25 = vsel %vm1235_vm2, %v1117_v58, %v1233_v56  ;;  %v1306_v58 = vmin.f32 %v2638_v10, %v2642_v46  ;;  %v3079_v10 = vld [vmem:[#allocation12_spill] sm:$0xff] }
 0x268   : > { %1244 = vst.msk [vmem:[%s2861_s12] sm:$0x3] %vm2854_vm3, %v1236_v25  ;;  %v1228_v12 = vmin.f32 %v1226_v37, %v1227_v14  ;;  %v1191_v31 = vmin.f32 %v1189_v50, %v1190_v9  ;;  %v1315_v46 = vmin.f32 %v3079_v10, %v2685_v34  ;;  %v3082_v34 = vld [vmem:[#allocation9_spill] sm:$0xff]  ;;  %v3089_v50 = vmin.f32 %v2770_v41, %v2772_v54  ;;  %v3090_v37 = vld [vmem:[#allocation16_spill] sm:$0xff]  ;;  %v3092_v9 = vld [vmem:[#allocation18_spill] sm:$0xff] }
 0x269   : > { %1304 = vmin.xlane.f32.xlu2 %v1303_v18  ;;  %v3093_v54 = vmin.f32 %v2824_v45, %v2830_v43  ;;  %v3095_v14 = vmin.f32 %v2838_v38, %v2840_v15 }
 0x26a   : > { %v1234_v52 = vrot.slane %v1228_v12, 7 }
 0x26c   : > { %v1237_v63 = vsel %vm1235_vm2, %v1191_v31, %v1234_v52  ;;  %v2867_v32 = vpop.xlane.xlu2 %1349  ;;  %v2949_v41 = vpop.xlane.xlu1 %1385 }
 0x26d   : > { %1245 = vst.msk [vmem:[%s2861_s12 + $0x2] sm:$0x3] %vm2854_vm3, %v1237_v63 }
 0x271   : > { %1400 = vmin.xlane.f32.xlu2 %v3077_v6 }
 0x274   : > { %v2875_v40 = vpop.xlane.xlu2 %1352 }
 0x277   : > { %1438 = vxpose.xlu0.b32.start [1/16] (narrow) %v2583_v44, 8  ;;  %v3078_v44 = vmin.f32 %v2677_v28, %v2679_v33  ;;  %v1321_v33 = vmin.f32 %v2711_v51, %v2715_v53  ;;  %v1327_v53 = vmin.f32 %v2737_v42, %v2739_v47  ;;  %v1333_v42 = vmin.f32 %v2774_v4, %v2780_v30  ;;  %v3094_v30 = vld [vmem:[#allocation19_spill] sm:$0xff] }
 0x279   : > { %1307 = vmin.xlane.f32.xlu2 %v1306_v58  ;;  %v1404_v52 = vpop.xlane.xlu0 %1403 }
 0x27c   : > { %v2880_v61 = vpop.xlane.xlu2 %1355 }
 0x27f   : > { %1439 = vxpose.xlu0.b32.cont [2/16] (narrow) %v2589_v16, 8 }
 0x281   : > { %1310 = vmin.xlane.f32.xlu2 %v1309_v27 }
 0x284   : > { %v2885_v55 = vpop.xlane.xlu2 %1358 }
 0x287   : > { %1440 = vxpose.xlu0.b32.cont [3/16] (narrow) %v2599_v5, 8 }
 0x289   : > { %1313 = vmin.xlane.f32.xlu2 %v1312_v62 }
 0x28c   : > { %v2890_v3 = vpop.xlane.xlu2 %1361 }
 0x28f   : > { %1441 = vxpose.xlu0.b32.cont [4/16] (narrow) %v2604_v0, 8  ;;  %v1318_v0 = vmin.f32 %v2696_v39, %v2700_v13  ;;  %v3084_v39 = vmin.f32 %v2722_v1, %v2724_v20  ;;  %v1330_v1 = vmin.f32 %v2750_v59, %v2756_v17  ;;  %v3087_v20 = vld [vmem:[#allocation14_spill] sm:$0xff]  ;;  %v1336_v17 = vmin.f32 %v2801_v2, %v2807_v8  ;;  %v3091_v59 = vld [vmem:[#allocation17_spill] sm:$0xff]  ;;  %v1392_v8 = vpop.xlane.xlu1 %1391 }
 0x290   : > { %1470 = vxpose.xlu1.b32.start [1/16] (narrow) %v2822_v36, 8 }
 0x291   : > { %1409 = vmin.xlane.f32.xlu2 %v3078_v44  ;;  %v1413_v58 = vpop.xlane.xlu0 %1412 }
 0x294   : > { %v2897_v16 = vpop.xlane.xlu2 %1364 }
 0x297   : > { %1442 = vxpose.xlu0.b32.cont [5/16] (narrow) %v3080_v22, 8  ;;  %v1398_v45 = vpop.xlane.xlu1 %1397 }
 0x298   : > { %1471 = vxpose.xlu1.b32.cont [2/16] (narrow) %v1299_v21, 8 }
 0x299   : > { %1316 = vmin.xlane.f32.xlu2 %v1315_v46 }
 0x29c   : > { %v2902_v5 = vpop.xlane.xlu2 %1367 }
 0x29f   : > { %1443 = vxpose.xlu0.b32.cont [6/16] (narrow) %v3081_v57, 8  ;;  %v1407_v38 = vpop.xlane.xlu1 %1406 }
 0x2a0   : > { %1472 = vxpose.xlu1.b32.cont [3/16] (narrow) %v1302_v48, 8 }
 0x2a1   : > { %1319 = vmin.xlane.f32.xlu2 %v1318_v0 }
 0x2a4   : > { %v2907_v28 = vpop.xlane.xlu2 %1370 }
 0x2a7   : > { %1444 = vxpose.xlu0.b32.cont [7/16] (narrow) %v3082_v34, 8  ;;  %v1416_v62 = vpop.xlane.xlu1 %1415 }
 0x2a9   : > { %1322 = vmin.xlane.f32.xlu2 %v1321_v33  ;;  %v1422_v44 = vpop.xlane.xlu0 %1421 }
 0x2ac   : > { %v2912_v36 = vpop.xlane.xlu2 %1373 }
 0x2af   : > { %1445 = vxpose.xlu0.b32.cont [8/16] (narrow) %v3083_v29, 8 }
 0x2b1   : > { %1418 = vmin.xlane.f32.xlu2 %v3084_v39  ;;  %v1425_v10 = vpop.xlane.xlu1 %1424 }
 0x2b4   : > { %v2918_v13 = vpop.xlane.xlu2 %1376 }
 0x2b7   : > { %1446 = vxpose.xlu0.b32.cont [9/16] (narrow) %v3085_v26, 8 }
 0x2b9   : > { %1325 = vmin.xlane.f32.xlu2 %v1324_v60 }
 0x2bc   : > { %v2923_v51 = vpop.xlane.xlu2 %1379 }
 0x2bf   : > { %1447 = vxpose.xlu0.b32.cont [10/16] (narrow) %v3086_v23, 8 }
 0x2c1   : > { %1328 = vmin.xlane.f32.xlu2 %v1327_v53  ;;  %v1431_v46 = vpop.xlane.xlu0 %1430 }
 0x2c4   : > { %v2928_v7 = vpop.xlane.xlu2 %1382 }
 0x2c7   : > { %1448 = vxpose.xlu0.b32.cont [11/16] (narrow) %v3087_v20, 8 }
 0x2c9   : > { %1331 = vmin.xlane.f32.xlu2 %v1330_v1 }
 0x2cc   : > { %v2933_v24 = vpop.xlane.xlu2 %1388 }
 0x2cf   : > { %1449 = vxpose.xlu0.b32.cont [12/16] (narrow) %v3088_v49, 8 }
 0x2d1   : > { %1427 = vmin.xlane.f32.xlu2 %v3089_v50 }
 0x2d4   : > { %v1395_v47 = vpop.xlane.xlu2 %1394 }
 0x2d7   : > { %1450 = vxpose.xlu0.b32.cont [13/16] (narrow) %v3090_v37, 8 }
 0x2d9   : > { %1334 = vmin.xlane.f32.xlu2 %v1333_v42 }
 0x2dc   : > { %v1305_v56 = vpop.xlane.xlu2 %1304 }
 0x2dd   : > { %1473 = vxpose.xlu1.b32.cont [4/16] (narrow) %v1305_v56, 8 }
 0x2df   : > { %1451 = vxpose.xlu0.b32.cont [14/16] (narrow) %v3091_v59, 8 }
 0x2e1   : > { %1337 = vmin.xlane.f32.xlu2 %v1336_v17 }
 0x2e4   : > { %v1401_v18 = vpop.xlane.xlu2 %1400 }
 0x2e7   : > { %1452 = vxpose.xlu0.b32.cont [15/16] (narrow) %v3092_v9, 8 }
 0x2e9   : > { %1340 = vmin.xlane.f32.xlu2 %v3093_v54 }
 0x2ec   : > { %v1308_v4 = vpop.xlane.xlu2 %1307 }
 0x2ed   : > { %1474 = vxpose.xlu1.b32.cont [5/16] (narrow) %v1308_v4, 8 }
 0x2ef   : > { %1453 = vxpose.xlu0.b32.end [16/16] (narrow) %v3094_v30, 8 }
 0x2f1   : > { %1436 = vmin.xlane.f32.xlu2 %v3095_v14 }
 0x2f4   : > { %v1311_v2 = vpop.xlane.xlu2 %1310 }
 0x2f5   : > { %1475 = vxpose.xlu1.b32.cont [6/16] (narrow) %v1311_v2, 8 }
 0x2f7   : > { %1534 = vxpose.xlu0.b32.start [1/16] (narrow) %v1392_v8, 8 }
 0x2fc   : > { %v1314_v25 = vpop.xlane.xlu2 %1313 }
 0x2fd   : > { %1476 = vxpose.xlu1.b32.cont [7/16] (narrow) %v1314_v25, 8 }
 0x2ff   : > { %1535 = vxpose.xlu0.b32.cont [2/16] (narrow) %v1395_v47, 8 }
 0x304   : > { %v1410_v12 = vpop.xlane.xlu2 %1409 }
 0x307   : > { %1536 = vxpose.xlu0.b32.cont [3/16] (narrow) %v1398_v45, 8 }
 0x30c   : > { %v1317_v43 = vpop.xlane.xlu2 %1316 }
 0x30d   : > { %1477 = vxpose.xlu1.b32.cont [8/16] (narrow) %v1317_v43, 8 }
 0x30f   : > { %1537 = vxpose.xlu0.b32.cont [4/16] (narrow) %v1401_v18, 8 }
 0x314   : > { %v1320_v31 = vpop.xlane.xlu2 %1319 }
 0x315   : > { %1478 = vxpose.xlu1.b32.cont [9/16] (narrow) %v1320_v31, 8 }
 0x317   : > { %1538 = vxpose.xlu0.b32.cont [5/16] (narrow) %v1404_v52, 8 }
 0x31a   : > { %1502 = vxpose.xlu2.b32.start [1/16] (narrow) %v2846_v11, 8 }
 0x31c   : > { %v1323_v15 = vpop.xlane.xlu2 %1322 }
 0x31d   : > { %1479 = vxpose.xlu1.b32.cont [10/16] (narrow) %v1323_v15, 8 }
 0x31f   : > { %1539 = vxpose.xlu0.b32.cont [6/16] (narrow) %v1407_v38, 8 }
 0x322   : > { %1503 = vxpose.xlu2.b32.cont [2/16] (narrow) %v2852_v35, 8 }
 0x324   : > { %v1419_v63 = vpop.xlane.xlu2 %1418 }
 0x327   : > { %1540 = vxpose.xlu0.b32.cont [7/16] (narrow) %v1410_v12, 8 }
 0x32a   : > { %1504 = vxpose.xlu2.b32.cont [3/16] (narrow) %v2867_v32, 8 }
 0x32c   : > { %v1326_v6 = vpop.xlane.xlu2 %1325 }
 0x32d   : > { %1480 = vxpose.xlu1.b32.cont [11/16] (narrow) %v1326_v6, 8 }
 0x32f   : > { %1541 = vxpose.xlu0.b32.cont [8/16] (narrow) %v1413_v58, 8 }
 0x332   : > { %1505 = vxpose.xlu2.b32.cont [4/16] (narrow) %v2875_v40, 8 }
 0x334   : > { %v1329_v27 = vpop.xlane.xlu2 %1328 }
 0x335   : > { %1481 = vxpose.xlu1.b32.cont [12/16] (narrow) %v1329_v27, 8 }
 0x337   : > { %1542 = vxpose.xlu0.b32.cont [9/16] (narrow) %v1416_v62, 8 }
 0x33a   : > { %1506 = vxpose.xlu2.b32.cont [5/16] (narrow) %v2880_v61, 8 }
 0x33c   : > { %v1332_v11 = vpop.xlane.xlu2 %1331 }
 0x33d   : > { %1482 = vxpose.xlu1.b32.cont [13/16] (narrow) %v1332_v11, 8 }
 0x33f   : > { %1543 = vxpose.xlu0.b32.cont [10/16] (narrow) %v1419_v63, 8 }
 0x342   : > { %1507 = vxpose.xlu2.b32.cont [6/16] (narrow) %v2885_v55, 8  ;;  %v1434_v55 = vpop.xlane.xlu1 %1433 }
 0x344   : > { %v1428_v35 = vpop.xlane.xlu2 %1427 }
 0x347   : > { %1544 = vxpose.xlu0.b32.cont [11/16] (narrow) %v1422_v44, 8 }
 0x34a   : > { %1508 = vxpose.xlu2.b32.cont [7/16] (narrow) %v2890_v3, 8 }
 0x34c   : > { %v1335_v32 = vpop.xlane.xlu2 %1334 }
 0x34d   : > { %1483 = vxpose.xlu1.b32.cont [14/16] (narrow) %v1335_v32, 8 }
 0x34f   : > { %1545 = vxpose.xlu0.b32.cont [12/16] (narrow) %v1425_v10, 8 }
 0x352   : > { %1509 = vxpose.xlu2.b32.cont [8/16] (narrow) %v2897_v16, 8  ;;  %v1454_v16 = vpop.trf.xlu0 }
 0x354   : > { %v1338_v40 = vpop.xlane.xlu2 %1337 }
 0x355   : > { %1484 = vxpose.xlu1.b32.cont [15/16] (narrow) %v1338_v40, 8 }
 0x357   : > { %1546 = vxpose.xlu0.b32.cont [13/16] (narrow) %v1428_v35, 8 }
 0x35a   : > { %1510 = vxpose.xlu2.b32.cont [9/16] (narrow) %v2902_v5, 8 }
 0x35c   : > { %v1341_v61 = vpop.xlane.xlu2 %1340 }
 0x35d   : > { %1485 = vxpose.xlu1.b32.end [16/16] (narrow) %v1341_v61, 8 }
 0x35f   : > { %1547 = vxpose.xlu0.b32.cont [14/16] (narrow) %v1431_v46, 8 }
 0x362   : > { %1511 = vxpose.xlu2.b32.cont [10/16] (narrow) %v2907_v28, 8 }
 0x364   : > { %v1437_v3 = vpop.xlane.xlu2 %1436 }
 0x367   : > { %1548 = vxpose.xlu0.b32.cont [15/16] (narrow) %v1434_v55, 8 }
 0x36a   : > { %1512 = vxpose.xlu2.b32.cont [11/16] (narrow) %v2912_v36, 8 }
 0x36f   : > { %1549 = vxpose.xlu0.b32.end [16/16] (narrow) %v1437_v3, 8 }
 0x372   : > { %1513 = vxpose.xlu2.b32.cont [12/16] (narrow) %v2918_v13, 8 }
 0x37a   : > { %1514 = vxpose.xlu2.b32.cont [13/16] (narrow) %v2923_v51, 8 }
 0x382   : > { %1515 = vxpose.xlu2.b32.cont [14/16] (narrow) %v2928_v7, 8 }
 0x389   : > { %v1486_v21 = vpop.trf.xlu1 }
 0x38a   : > { %1516 = vxpose.xlu2.b32.cont [15/16] (narrow) %v2949_v41, 8 }
 0x392   : > { %1517 = vxpose.xlu2.b32.end [16/16] (narrow) %v2933_v24, 8 }
 0x39b   : > { %v1550_v22 = vpop.trf.xlu0 }
 0x3af   : > { %1569 = sbr.rel (%p1978_p4) target bundleno = 953 (0x3b9), region = 78 }
 0x3b3   : > { %v1518_v5 = vpop.trf.xlu2 }
 0x3b4   : > { %v1574_v0 = vrot.slane %v1486_v21, 7  ;;  %v1575_v48 = vrot.slane %v1550_v22, 7 }
 0x3b6   : > { %v1576_v57 = vsel %vm1235_vm2, %v1454_v16, %v1574_v0  ;;  %v1577_v28 = vsel %vm1235_vm2, %v1518_v5, %v1575_v48 }
 0x3b7   : > { %1580 = vst.msk [vmem:[%s2972_s27] sm:$0x3] %vm2854_vm3, %v1576_v57 }
 0x3b8   : > { %1581 = vst.msk [vmem:[%s2972_s27 + $0x2] sm:$0x3] %vm2854_vm3, %v1577_v28 }
 0x3b9 PF: > { %p1979_p5 = scmp.le.s32.totalorder %s2148_s18, 0 }
 0x3bb   : > { %1585 = sbr.rel (%p1979_p5) target bundleno = 967 (0x3c7), region = 82 }
 0x3c0   : > { %v1586_v33 = vld [vmem:[%s2972_s27] sm:$0x3]  ;;  %v1592_v34 = vrot.slane %v1486_v21, 7  ;;  %v1587_v36 = vld [vmem:[%s2972_s27 + $0x2] sm:$0x3]  ;;  %v1593_v29 = vrot.slane %v1550_v22, 7 }
 0x3c2   : > { %v1594_v39 = vsel %vm1235_vm2, %v1454_v16, %v1592_v34  ;;  %v1595_v13 = vsel %vm1235_vm2, %v1518_v5, %v1593_v29 }
 0x3c3   : > { %v1598_v60 = vmin.f32 %v1586_v33, %v1594_v39  ;;  %v1599_v26 = vmin.f32 %v1587_v36, %v1595_v13 }
 0x3c5   : > { %1600 = vst.msk [vmem:[%s2972_s27] sm:$0x3] %vm2854_vm3, %v1598_v60 }
 0x3c6   : > { %1601 = vst.msk [vmem:[%s2972_s27 + $0x2] sm:$0x3] %vm2854_vm3, %v1599_v26 }
 0x3c7 PF: > { %1612 = sbr.rel (!%p2283_p12) target bundleno = 973 (0x3cd), region = 86  ;;  %s1982_s4 = sshll.u32 (%p2283_p12), %s2148_s18, 1  ;;  %v1636_v51 = vld [vmem:[%s2861_s12] sm:$0x3] (%p2283_p12)  ;;  %v1638_v53 = vld [vmem:[%s2861_s12 + $0x2] sm:$0x3] (%p2283_p12) }
 0x3c8   : > { %s1983_s23 = sshll.u32 (%p2283_p12), %s2152_s19, 3 }
 0x3c9   : > { %s1618_s6 = sadd.s32 (%p2283_p12), %s1983_s23, %s1982_s4 }
 0x3ca   : > { %s1619_s25 = scalar_lea.vmem (%p2283_p12), %s3046_s2, %s1618_s6 }
 0x3cb   : > { %1637 = vst [vmem:[%s1619_s25] sm:$0x3] (%p2283_p12), %v1636_v51 }
 0x3cc   : > { %1639 = vst [vmem:[%s1619_s25 + $0x4] sm:$0x3] %v1638_v53 }
 0x3cd PF: > { %1659 = sbr.rel (!%p2290_p13) target bundleno = 978 (0x3d2), region = 120  ;;  %s1984_s10 = sshll.u32 (%p2290_p13), %s2152_s19, 1  ;;  %v1681_v19 = vld [vmem:[%s2972_s27] sm:$0x3] (%p2290_p13) }
 0x3ce   : > { %v1683_v23 = vld [vmem:[%s2972_s27 + $0x2] sm:$0x3] (%p2290_p13)  ;;  %s1664_s26 = scalar_lea.vmem (%p2290_p13), %s3047_s3, %s1984_s10 }
 0x3cf   : > { %1682 = vst [vmem:[%s1664_s26] sm:$0x3] (%p2290_p13), %v1681_v19 }
 0x3d0   : > { %1684 = vst [vmem:[%s1664_s26 + $0x4] sm:$0x3] (%p2290_p13), %v1683_v23 }
 0x3d2 PF: > { %s14_s22 = sadd.s32 1, %s2164_s22   ;;  %s3096_s11 = sld [smem:[#allocation6_spill]] }
 0x3d3   : > { %p11_p6 = scmp.ge.s32.totalorder %s14_s22, 6   ;;  %s3097_s12 = smov %s2128_s13 }
 0x3d4   : > { %s3098_s13 = smov %s2281_s9  ;;  %s3099_s14 = smov %s2136_s15 }
 0x3d5   : > { %s3100_s15 = smov %s2264_s30  ;;  %s3101_s16 = smov %s2144_s17 }
 0x3d6   : > { %s3102_s17 = smov %s2275_s7  ;;  %s3103_s18 = smov %s2156_s20 }
 0x3d7   : > { %s3104_s19 = smov %s2160_s21  ;;  %s3105_s20 = smov %s3108_s24 }
 0x3d8   : > { %s3106_s21 = smov %s3096_s11  ;;  %13 = sbr.rel (!%p11_p6) target bundleno = 6 (0x6), region = 205 }

</bundles_post_ra>
